<compile_context>
chip_gen: v7x
topology: tpu7x:2x2x1
jax: 0.10.0
libtpu: 0.0.40
codegen_flags: <defaults>
</compile_context>

<pallas_src>
import jax
import jax.numpy as jnp
from jax.experimental import pallas as pl
from jax.experimental.pallas import tpu as pltpu


def _round_up(x, m):
    return (x + m - 1) // m * m


ONES = 128  # lane width of the bias-folding all-ones block


# --------------------------------------------------------------------------
# Kernel
# --------------------------------------------------------------------------
def _decoder2rnn_kernel(tok_ref, emb_ref, h0_ref, wbig_ref, wih2_ref, wfc_ref,
                        logits_ref, hnew_ref, xcat_sc, x2_sc):
    Bp, Hp = hnew_ref.shape
    Ep = xcat_sc.shape[1] - Hp - ONES

    # ---- bias-folding ones blocks (written once, lane-aligned) -------------
    ones_blk = jnp.ones((Bp, ONES), jnp.float32)
    xcat_sc[:, Ep + Hp:] = ones_blk
    x2_sc[:, Hp:] = ones_blk

    # ---- embedding lookup: row gather straight into the fused input --------
    # token ids live in SMEM; table rows are read with a dynamic sublane slice.
    for b in range(Bp):                       # Bp is tiny & static (8)
        xcat_sc[pl.ds(b, 1), pl.ds(0, Ep)] = emb_ref[pl.ds(tok_ref[b], 1), :]

    h0 = h0_ref[...]                           # (Bp, Hp)
    xcat_sc[:, Ep:Ep + Hp] = h0

    # ---- one fused lane-dense matmul: [gi1 | gh1 | gh2] (biases folded) ----
    g = jnp.dot(xcat_sc[...], wbig_ref[...], preferred_element_type=jnp.float32)
    gi1 = g[:, 0:3 * Hp]
    gh1 = g[:, 3 * Hp:6 * Hp]
    gh2 = g[:, 6 * Hp:9 * Hp]

    def gru_gates(gi, gh, h):
        # PyTorch GRU math, gate order (r, z, n); slices are 128-lane aligned.
        r = jax.nn.sigmoid(gi[:, 0:Hp] + gh[:, 0:Hp])
        z = jax.nn.sigmoid(gi[:, Hp:2 * Hp] + gh[:, Hp:2 * Hp])
        n = jnp.tanh(gi[:, 2 * Hp:3 * Hp] + r * gh[:, 2 * Hp:3 * Hp])
        return (1.0 - z) * n + z * h

    # gru1(emb, hidden) -> out1 ; gru2(out1, hidden) -> new hidden
    out1 = gru_gates(gi1, gh1, h0)

    x2_sc[:, 0:Hp] = out1
    gi2 = jnp.dot(x2_sc[...], wih2_ref[...],
                  preferred_element_type=jnp.float32)        # bias folded
    hnew = gru_gates(gi2, gh2, h0)

    # ---- fc: logits over the vocabulary (bias folded) ----------------------
    x2_sc[:, 0:Hp] = hnew
    logits_ref[...] = jnp.dot(x2_sc[...], wfc_ref[...],
                              preferred_element_type=jnp.float32)
    hnew_ref[...] = hnew                       # (Bp, Hp) lane-dense store


# --------------------------------------------------------------------------
# Host-side weight packing (pad to 128 lanes, fuse gate matmuls, fold biases)
# --------------------------------------------------------------------------
def pack_params(params):
    V, E = params["embedding"].shape
    H = params["w_hh1"].shape[1]
    Ep, Hp, Vp = _round_up(E, 128), _round_up(H, 128), _round_up(V, 128)

    def pad_to(a, shape):
        out = jnp.zeros(shape, jnp.float32)
        return out.at[tuple(slice(0, s) for s in a.shape)].set(a)

    def gate_pack_T(w, in_pad):
        # (3H, in) PyTorch weight -> (in_pad, 3*Hp), gates [r|z|n] lane-padded
        cols = [pad_to(w[g * H:(g + 1) * H, :].T, (in_pad, Hp)) for g in range(3)]
        return jnp.concatenate(cols, axis=1)

    def gate_pack_b(b):
        return jnp.concatenate(
            [pad_to(b[g * H:(g + 1) * H], (Hp,)) for g in range(3)], axis=0)

    A_ih1 = gate_pack_T(params["w_ih1"], Ep)
    A_hh1 = gate_pack_T(params["w_hh1"], Hp)
    A_hh2 = gate_pack_T(params["w_hh2"], Hp)
    A_ih2 = gate_pack_T(params["w_ih2"], Hp)

    b_ih1 = gate_pack_b(params["b_ih1"])
    b_hh1 = gate_pack_b(params["b_hh1"])
    b_hh2 = gate_pack_b(params["b_hh2"])
    b_ih2 = gate_pack_b(params["b_ih2"])

    # big fused weight: x = [emb | h0 | ones] -> [gi1 | gh1 | gh2], biases folded
    w_big = jnp.zeros((Ep + Hp + ONES, 9 * Hp), jnp.float32)
    w_big = w_big.at[:Ep, 0:3 * Hp].set(A_ih1)
    w_big = w_big.at[Ep:Ep + Hp, 3 * Hp:6 * Hp].set(A_hh1)
    w_big = w_big.at[Ep:Ep + Hp, 6 * Hp:9 * Hp].set(A_hh2)
    w_big = w_big.at[Ep + Hp, 0:3 * Hp].set(b_ih1)
    w_big = w_big.at[Ep + Hp, 3 * Hp:6 * Hp].set(b_hh1)
    w_big = w_big.at[Ep + Hp, 6 * Hp:9 * Hp].set(b_hh2)

    # gru2 input weight with bias folded: x = [out1 | ones]
    w_ih2_aug = jnp.zeros((Hp + ONES, 3 * Hp), jnp.float32)
    w_ih2_aug = w_ih2_aug.at[:Hp, :].set(A_ih2)
    w_ih2_aug = w_ih2_aug.at[Hp, :].set(b_ih2)

    # fc with bias folded: x = [hnew | ones]
    w_fc_aug = jnp.zeros((Hp + ONES, Vp), jnp.float32)
    w_fc_aug = w_fc_aug.at[:Hp, :].set(pad_to(params["w_fc"].T, (Hp, Vp)))
    w_fc_aug = w_fc_aug.at[Hp, :V].set(params["b_fc"])

    emb_p = pad_to(params["embedding"], (_round_up(V, 8), Ep))

    return {"emb": emb_p, "w_big": w_big, "w_ih2": w_ih2_aug, "w_fc": w_fc_aug,
            "dims": (V, E, H)}


# --------------------------------------------------------------------------
# Wrapper
# --------------------------------------------------------------------------
def decoder2rnn_forward(packed, input_token, hidden):
    """input_token: (B,) int32, hidden: (1,B,H) f32 -> (logits (B,V), hidden (1,B,H))"""
    V, E, H = packed["dims"]
    emb_p, w_big = packed["emb"], packed["w_big"]
    w_ih2, w_fc = packed["w_ih2"], packed["w_fc"]
    Ep = emb_p.shape[1]
    Vp = w_fc.shape[1]
    Hp = w_ih2.shape[1] // 3
    B = input_token.shape[0]
    Bp = _round_up(max(B, 1), 8)

    tok_p = jnp.zeros((Bp,), jnp.int32).at[:B].set(input_token.astype(jnp.int32))
    h0 = hidden.reshape(B, H).astype(jnp.float32)
    h0_p = jnp.zeros((Bp, Hp), jnp.float32).at[:B, :H].set(h0)

    vmem = pl.BlockSpec(memory_space=pltpu.MemorySpace.VMEM)
    smem = pl.BlockSpec(memory_space=pltpu.MemorySpace.SMEM)

    logits_p, hnew_p = pl.pallas_call(
        _decoder2rnn_kernel,
        out_shape=(jax.ShapeDtypeStruct((Bp, Vp), jnp.float32),
                   jax.ShapeDtypeStruct((Bp, Hp), jnp.float32)),
        in_specs=[smem, vmem, vmem, vmem, vmem, vmem],
        out_specs=(vmem, vmem),
        scratch_shapes=[pltpu.VMEM((Bp, Ep + Hp + ONES), jnp.float32),
                        pltpu.VMEM((Bp, Hp + ONES), jnp.float32)],
    )(tok_p, emb_p, h0_p, w_big, w_ih2, w_fc)

    logits = logits_p[:B, :V]
    new_hidden = hnew_p[:B, :H].reshape(1, B, H)
    return logits, new_hidden


# --------------------------------------------------------------------------
# Parameters (PyTorch layout) + pure-JAX reference for a correctness check
# --------------------------------------------------------------------------
def init_params(key, vocab_size, emb_dim, hidden_dim, pad_idx):
    ks = jax.random.split(key, 12)
    s = 1.0 / jnp.sqrt(hidden_dim)

    def unif(k, shape):
        return jax.random.uniform(k, shape, jnp.float32, -s, s)

    emb = jax.random.normal(ks[0], (vocab_size, emb_dim), jnp.float32)
    emb = emb.at[pad_idx].set(0.0)              # padding_idx row is zero

    return {
        "embedding": emb,
        "w_ih1": unif(ks[1], (3 * hidden_dim, emb_dim)),
        "w_hh1": unif(ks[2], (3 * hidden_dim, hidden_dim)),
        "b_ih1": unif(ks[3], (3 * hidden_dim,)),
        "b_hh1": unif(ks[4], (3 * hidden_dim,)),
        "w_ih2": unif(ks[5], (3 * hidden_dim, hidden_dim)),
        "w_hh2": unif(ks[6], (3 * hidden_dim, hidden_dim)),
        "b_ih2": unif(ks[7], (3 * hidden_dim,)),
        "b_hh2": unif(ks[8], (3 * hidden_dim,)),
        "w_fc": unif(ks[9], (vocab_size, hidden_dim)),
        "b_fc": unif(ks[10], (vocab_size,)),
    }


def reference_forward(params, input_token, hidden):
    emb = params["embedding"][input_token]       # (B, E); dropout = identity (eval)
    h0 = hidden[0]                               # (B, H)
    H = h0.shape[1]

    def gru(x, h, w_ih, w_hh, b_ih, b_hh):
        gi = x @ w_ih.T + b_ih
        gh = h @ w_hh.T + b_hh
        r = jax.nn.sigmoid(gi[:, :H] + gh[:, :H])
        z = jax.nn.sigmoid(gi[:, H:2 * H] + gh[:, H:2 * H])
        n = jnp.tanh(gi[:, 2 * H:] + r * gh[:, 2 * H:])
        return (1.0 - z) * n + z * h

    out1 = gru(emb, h0, params["w_ih1"], params["w_hh1"],
               params["b_ih1"], params["b_hh1"])
    hnew = gru(out1, h0, params["w_ih2"], params["w_hh2"],
               params["b_ih2"], params["b_hh2"])
    logits = hnew @ params["w_fc"].T + params["b_fc"]
    return logits, hnew[None]


if __name__ == "__main__":
    VOCAB_SIZE = 32
    EMB_DIM = 16
    HIDDEN_DIM = 32
    BATCH = 4
    vocab = {"<pad>": 0}

    key = jax.random.PRNGKey(0)
    k_param, k_tok, k_hid = jax.random.split(key, 3)

    params = init_params(k_param, VOCAB_SIZE, EMB_DIM, HIDDEN_DIM, vocab["<pad>"])
    packed = pack_params(params)

    input_token = jax.random.randint(k_tok, (BATCH,), 0, VOCAB_SIZE, jnp.int32)
    hidden = jax.random.normal(k_hid, (1, BATCH, HIDDEN_DIM), jnp.float32)

    logits, new_hidden = decoder2rnn_forward(packed, input_token, hidden)
    jax.block_until_ready((logits, new_hidden))

    ref_logits, ref_hidden = reference_forward(params, input_token, hidden)

    assert logits.shape == (BATCH, VOCAB_SIZE)
    assert new_hidden.shape == (1, BATCH, HIDDEN_DIM)
    assert jnp.allclose(logits, ref_logits, atol=2e-3, rtol=2e-3)
    assert jnp.allclose(new_hidden, ref_hidden, atol=2e-3, rtol=2e-3)
    print("KERNEL_OK")
</pallas_src>

<mosaic_0001>
module attributes {stable_mosaic.version = 11 : i64} {
  func.func @_decoder2rnn_kernel(%arg0: memref<8xi32, #tpu.memory_space<smem>>, %arg1: memref<32x128xf32, #tpu.memory_space<vmem>>, %arg2: memref<8x128xf32, #tpu.memory_space<vmem>>, %arg3: memref<384x1152xf32, #tpu.memory_space<vmem>>, %arg4: memref<256x384xf32, #tpu.memory_space<vmem>>, %arg5: memref<256x128xf32, #tpu.memory_space<vmem>>, %arg6: memref<8x128xf32, #tpu.memory_space<vmem>>, %arg7: memref<8x128xf32, #tpu.memory_space<vmem>>, %arg8: memref<8x384xf32, #tpu.memory_space<vmem>>, %arg9: memref<8x256xf32, #tpu.memory_space<vmem>>) attributes {dimension_semantics = [], scalar_prefetch = 0 : i64, scratch_operands = 2 : i64, tpu.core_type = #tpu.core_type<tc>} {
    %cst = arith.constant 1.000000e+00 : f32
    %0 = vector.broadcast %cst : f32 to vector<8x128xf32>
    %c0 = arith.constant 0 : index
    %c256 = arith.constant 256 : index
    %1 = vector.load %arg8[%c0, %c256] : memref<8x384xf32, #tpu.memory_space<vmem>>, vector<8x128xf32>
    tpu.vector_store %arg8[%c0, %c256], %0 {strides = array<i32>} : memref<8x384xf32, #tpu.memory_space<vmem>>, vector<8x128xf32>,
    %c0_0 = arith.constant 0 : index
    %c128 = arith.constant 128 : index
    %2 = vector.load %arg9[%c0_0, %c128] : memref<8x256xf32, #tpu.memory_space<vmem>>, vector<8x128xf32>
    tpu.vector_store %arg9[%c0_0, %c128], %0 {strides = array<i32>} : memref<8x256xf32, #tpu.memory_space<vmem>>, vector<8x128xf32>,
    %c0_1 = arith.constant 0 : index
    %3 = memref.load %arg0[%c0_1] : memref<8xi32, #tpu.memory_space<smem>>
    %4 = arith.index_cast %3 : i32 to index
    %c0_2 = arith.constant 0 : index
    %5 = vector.load %arg1[%4, %c0_2] : memref<32x128xf32, #tpu.memory_space<vmem>>, vector<1x128xf32>
    %c0_3 = arith.constant 0 : index
    %c0_4 = arith.constant 0 : index
    %6 = vector.load %arg8[%c0_3, %c0_4] : memref<8x384xf32, #tpu.memory_space<vmem>>, vector<1x128xf32>
    tpu.vector_store %arg8[%c0_3, %c0_4], %5 {strides = array<i32>} : memref<8x384xf32, #tpu.memory_space<vmem>>, vector<1x128xf32>,
    %c1 = arith.constant 1 : index
    %7 = memref.load %arg0[%c1] : memref<8xi32, #tpu.memory_space<smem>>
    %8 = arith.index_cast %7 : i32 to index
    %c0_5 = arith.constant 0 : index
    %9 = vector.load %arg1[%8, %c0_5] : memref<32x128xf32, #tpu.memory_space<vmem>>, vector<1x128xf32>
    %c1_6 = arith.constant 1 : index
    %c0_7 = arith.constant 0 : index
    %10 = vector.load %arg8[%c1_6, %c0_7] : memref<8x384xf32, #tpu.memory_space<vmem>>, vector<1x128xf32>
    tpu.vector_store %arg8[%c1_6, %c0_7], %9 {strides = array<i32>} : memref<8x384xf32, #tpu.memory_space<vmem>>, vector<1x128xf32>,
    %c2 = arith.constant 2 : index
    %11 = memref.load %arg0[%c2] : memref<8xi32, #tpu.memory_space<smem>>
    %12 = arith.index_cast %11 : i32 to index
    %c0_8 = arith.constant 0 : index
    %13 = vector.load %arg1[%12, %c0_8] : memref<32x128xf32, #tpu.memory_space<vmem>>, vector<1x128xf32>
    %c2_9 = arith.constant 2 : index
    %c0_10 = arith.constant 0 : index
    %14 = vector.load %arg8[%c2_9, %c0_10] : memref<8x384xf32, #tpu.memory_space<vmem>>, vector<1x128xf32>
    tpu.vector_store %arg8[%c2_9, %c0_10], %13 {strides = array<i32>} : memref<8x384xf32, #tpu.memory_space<vmem>>, vector<1x128xf32>,
    %c3 = arith.constant 3 : index
    %15 = memref.load %arg0[%c3] : memref<8xi32, #tpu.memory_space<smem>>
    %16 = arith.index_cast %15 : i32 to index
    %c0_11 = arith.constant 0 : index
    %17 = vector.load %arg1[%16, %c0_11] : memref<32x128xf32, #tpu.memory_space<vmem>>, vector<1x128xf32>
    %c3_12 = arith.constant 3 : index
    %c0_13 = arith.constant 0 : index
    %18 = vector.load %arg8[%c3_12, %c0_13] : memref<8x384xf32, #tpu.memory_space<vmem>>, vector<1x128xf32>
    tpu.vector_store %arg8[%c3_12, %c0_13], %17 {strides = array<i32>} : memref<8x384xf32, #tpu.memory_space<vmem>>, vector<1x128xf32>,
    %c4 = arith.constant 4 : index
    %19 = memref.load %arg0[%c4] : memref<8xi32, #tpu.memory_space<smem>>
    %20 = arith.index_cast %19 : i32 to index
    %c0_14 = arith.constant 0 : index
    %21 = vector.load %arg1[%20, %c0_14] : memref<32x128xf32, #tpu.memory_space<vmem>>, vector<1x128xf32>
    %c4_15 = arith.constant 4 : index
    %c0_16 = arith.constant 0 : index
    %22 = vector.load %arg8[%c4_15, %c0_16] : memref<8x384xf32, #tpu.memory_space<vmem>>, vector<1x128xf32>
    tpu.vector_store %arg8[%c4_15, %c0_16], %21 {strides = array<i32>} : memref<8x384xf32, #tpu.memory_space<vmem>>, vector<1x128xf32>,
    %c5 = arith.constant 5 : index
    %23 = memref.load %arg0[%c5] : memref<8xi32, #tpu.memory_space<smem>>
    %24 = arith.index_cast %23 : i32 to index
    %c0_17 = arith.constant 0 : index
    %25 = vector.load %arg1[%24, %c0_17] : memref<32x128xf32, #tpu.memory_space<vmem>>, vector<1x128xf32>
    %c5_18 = arith.constant 5 : index
    %c0_19 = arith.constant 0 : index
    %26 = vector.load %arg8[%c5_18, %c0_19] : memref<8x384xf32, #tpu.memory_space<vmem>>, vector<1x128xf32>
    tpu.vector_store %arg8[%c5_18, %c0_19], %25 {strides = array<i32>} : memref<8x384xf32, #tpu.memory_space<vmem>>, vector<1x128xf32>,
    %c6 = arith.constant 6 : index
    %27 = memref.load %arg0[%c6] : memref<8xi32, #tpu.memory_space<smem>>
    %28 = arith.index_cast %27 : i32 to index
    %c0_20 = arith.constant 0 : index
    %29 = vector.load %arg1[%28, %c0_20] : memref<32x128xf32, #tpu.memory_space<vmem>>, vector<1x128xf32>
    %c6_21 = arith.constant 6 : index
    %c0_22 = arith.constant 0 : index
    %30 = vector.load %arg8[%c6_21, %c0_22] : memref<8x384xf32, #tpu.memory_space<vmem>>, vector<1x128xf32>
    tpu.vector_store %arg8[%c6_21, %c0_22], %29 {strides = array<i32>} : memref<8x384xf32, #tpu.memory_space<vmem>>, vector<1x128xf32>,
    %c7 = arith.constant 7 : index
    %31 = memref.load %arg0[%c7] : memref<8xi32, #tpu.memory_space<smem>>
    %32 = arith.index_cast %31 : i32 to index
    %c0_23 = arith.constant 0 : index
    %33 = vector.load %arg1[%32, %c0_23] : memref<32x128xf32, #tpu.memory_space<vmem>>, vector<1x128xf32>
    %c7_24 = arith.constant 7 : index
    %c0_25 = arith.constant 0 : index
    %34 = vector.load %arg8[%c7_24, %c0_25] : memref<8x384xf32, #tpu.memory_space<vmem>>, vector<1x128xf32>
    tpu.vector_store %arg8[%c7_24, %c0_25], %33 {strides = array<i32>} : memref<8x384xf32, #tpu.memory_space<vmem>>, vector<1x128xf32>,
    %c0_26 = arith.constant 0 : index
    %c0_27 = arith.constant 0 : index
    %35 = vector.load %arg2[%c0_26, %c0_27] : memref<8x128xf32, #tpu.memory_space<vmem>>, vector<8x128xf32>
    %c0_28 = arith.constant 0 : index
    %c128_29 = arith.constant 128 : index
    %36 = vector.load %arg8[%c0_28, %c128_29] : memref<8x384xf32, #tpu.memory_space<vmem>>, vector<8x128xf32>
    tpu.vector_store %arg8[%c0_28, %c128_29], %35 {strides = array<i32>} : memref<8x384xf32, #tpu.memory_space<vmem>>, vector<8x128xf32>,
    %c0_30 = arith.constant 0 : index
    %c0_31 = arith.constant 0 : index
    %37 = vector.load %arg8[%c0_30, %c0_31] : memref<8x384xf32, #tpu.memory_space<vmem>>, vector<8x384xf32>
    %c0_32 = arith.constant 0 : index
    %c0_33 = arith.constant 0 : index
    %38 = vector.load %arg3[%c0_32, %c0_33] : memref<384x1152xf32, #tpu.memory_space<vmem>>, vector<384x1152xf32>
    %cst_34 = arith.constant dense<0.000000e+00> : vector<8x1152xf32>
    %39 = tpu.matmul %37, %38, %cst_34 {dimension_numbers = #tpu.dot_dimension_numbers<[1], [0], [0], [1], [0, 0, 1, 1], [], []>} : vector<8x384xf32>, vector<384x1152xf32>, vector<8x1152xf32> -> vector<8x1152xf32>
    %40 = vector.extract_strided_slice %39 {offsets = [0, 0], sizes = [8, 384], strides = [1, 1]} : vector<8x1152xf32> to vector<8x384xf32>
    %41 = vector.extract_strided_slice %39 {offsets = [0, 384], sizes = [8, 384], strides = [1, 1]} : vector<8x1152xf32> to vector<8x384xf32>
    %42 = vector.extract_strided_slice %39 {offsets = [0, 768], sizes = [8, 384], strides = [1, 1]} : vector<8x1152xf32> to vector<8x384xf32>
    %43 = vector.extract_strided_slice %40 {offsets = [0, 0], sizes = [8, 128], strides = [1, 1]} : vector<8x384xf32> to vector<8x128xf32>
    %44 = vector.extract_strided_slice %41 {offsets = [0, 0], sizes = [8, 128], strides = [1, 1]} : vector<8x384xf32> to vector<8x128xf32>
    %45 = arith.addf %43, %44 : vector<8x128xf32>
    %46 = arith.negf %45 : vector<8x128xf32>
    %47 = math.exp %46 : vector<8x128xf32>
    %cst_35 = arith.constant 1.000000e+00 : f32
    %48 = vector.broadcast %cst_35 : f32 to vector<8x128xf32>
    %49 = arith.addf %48, %47 : vector<8x128xf32>
    %50 = arith.divf %48, %49 : vector<8x128xf32>
    %51 = vector.extract_strided_slice %40 {offsets = [0, 128], sizes = [8, 128], strides = [1, 1]} : vector<8x384xf32> to vector<8x128xf32>
    %52 = vector.extract_strided_slice %41 {offsets = [0, 128], sizes = [8, 128], strides = [1, 1]} : vector<8x384xf32> to vector<8x128xf32>
    %53 = arith.addf %51, %52 : vector<8x128xf32>
    %54 = arith.negf %53 : vector<8x128xf32>
    %55 = math.exp %54 : vector<8x128xf32>
    %cst_36 = arith.constant 1.000000e+00 : f32
    %56 = vector.broadcast %cst_36 : f32 to vector<8x128xf32>
    %57 = arith.addf %56, %55 : vector<8x128xf32>
    %58 = arith.divf %56, %57 : vector<8x128xf32>
    %59 = vector.extract_strided_slice %40 {offsets = [0, 256], sizes = [8, 128], strides = [1, 1]} : vector<8x384xf32> to vector<8x128xf32>
    %60 = vector.extract_strided_slice %41 {offsets = [0, 256], sizes = [8, 128], strides = [1, 1]} : vector<8x384xf32> to vector<8x128xf32>
    %61 = arith.mulf %50, %60 : vector<8x128xf32>
    %62 = arith.addf %59, %61 : vector<8x128xf32>
    %63 = math.tanh %62 : vector<8x128xf32>
    %cst_37 = arith.constant 1.000000e+00 : f32
    %64 = vector.broadcast %cst_37 : f32 to vector<8x128xf32>
    %65 = arith.subf %64, %58 : vector<8x128xf32>
    %66 = arith.mulf %65, %63 : vector<8x128xf32>
    %67 = arith.mulf %58, %35 : vector<8x128xf32>
    %68 = arith.addf %66, %67 : vector<8x128xf32>
    %c0_38 = arith.constant 0 : index
    %c0_39 = arith.constant 0 : index
    %69 = vector.load %arg9[%c0_38, %c0_39] : memref<8x256xf32, #tpu.memory_space<vmem>>, vector<8x128xf32>
    tpu.vector_store %arg9[%c0_38, %c0_39], %68 {strides = array<i32>} : memref<8x256xf32, #tpu.memory_space<vmem>>, vector<8x128xf32>,
    %c0_40 = arith.constant 0 : index
    %c0_41 = arith.constant 0 : index
    %70 = vector.load %arg9[%c0_40, %c0_41] : memref<8x256xf32, #tpu.memory_space<vmem>>, vector<8x256xf32>
    %c0_42 = arith.constant 0 : index
    %c0_43 = arith.constant 0 : index
    %71 = vector.load %arg4[%c0_42, %c0_43] : memref<256x384xf32, #tpu.memory_space<vmem>>, vector<256x384xf32>
    %cst_44 = arith.constant dense<0.000000e+00> : vector<8x384xf32>
    %72 = tpu.matmul %70, %71, %cst_44 {dimension_numbers = #tpu.dot_dimension_numbers<[1], [0], [0], [1], [0, 0, 1, 1], [], []>} : vector<8x256xf32>, vector<256x384xf32>, vector<8x384xf32> -> vector<8x384xf32>
    %73 = vector.extract_strided_slice %72 {offsets = [0, 0], sizes = [8, 128], strides = [1, 1]} : vector<8x384xf32> to vector<8x128xf32>
    %74 = vector.extract_strided_slice %42 {offsets = [0, 0], sizes = [8, 128], strides = [1, 1]} : vector<8x384xf32> to vector<8x128xf32>
    %75 = arith.addf %73, %74 : vector<8x128xf32>
    %76 = arith.negf %75 : vector<8x128xf32>
    %77 = math.exp %76 : vector<8x128xf32>
    %cst_45 = arith.constant 1.000000e+00 : f32
    %78 = vector.broadcast %cst_45 : f32 to vector<8x128xf32>
    %79 = arith.addf %78, %77 : vector<8x128xf32>
    %80 = arith.divf %78, %79 : vector<8x128xf32>
    %81 = vector.extract_strided_slice %72 {offsets = [0, 128], sizes = [8, 128], strides = [1, 1]} : vector<8x384xf32> to vector<8x128xf32>
    %82 = vector.extract_strided_slice %42 {offsets = [0, 128], sizes = [8, 128], strides = [1, 1]} : vector<8x384xf32> to vector<8x128xf32>
    %83 = arith.addf %81, %82 : vector<8x128xf32>
    %84 = arith.negf %83 : vector<8x128xf32>
    %85 = math.exp %84 : vector<8x128xf32>
    %cst_46 = arith.constant 1.000000e+00 : f32
    %86 = vector.broadcast %cst_46 : f32 to vector<8x128xf32>
    %87 = arith.addf %86, %85 : vector<8x128xf32>
    %88 = arith.divf %86, %87 : vector<8x128xf32>
    %89 = vector.extract_strided_slice %72 {offsets = [0, 256], sizes = [8, 128], strides = [1, 1]} : vector<8x384xf32> to vector<8x128xf32>
    %90 = vector.extract_strided_slice %42 {offsets = [0, 256], sizes = [8, 128], strides = [1, 1]} : vector<8x384xf32> to vector<8x128xf32>
    %91 = arith.mulf %80, %90 : vector<8x128xf32>
    %92 = arith.addf %89, %91 : vector<8x128xf32>
    %93 = math.tanh %92 : vector<8x128xf32>
    %cst_47 = arith.constant 1.000000e+00 : f32
    %94 = vector.broadcast %cst_47 : f32 to vector<8x128xf32>
    %95 = arith.subf %94, %88 : vector<8x128xf32>
    %96 = arith.mulf %95, %93 : vector<8x128xf32>
    %97 = arith.mulf %88, %35 : vector<8x128xf32>
    %98 = arith.addf %96, %97 : vector<8x128xf32>
    %c0_48 = arith.constant 0 : index
    %c0_49 = arith.constant 0 : index
    %99 = vector.load %arg9[%c0_48, %c0_49] : memref<8x256xf32, #tpu.memory_space<vmem>>, vector<8x128xf32>
    tpu.vector_store %arg9[%c0_48, %c0_49], %98 {strides = array<i32>} : memref<8x256xf32, #tpu.memory_space<vmem>>, vector<8x128xf32>,
    %c0_50 = arith.constant 0 : index
    %c0_51 = arith.constant 0 : index
    %100 = vector.load %arg9[%c0_50, %c0_51] : memref<8x256xf32, #tpu.memory_space<vmem>>, vector<8x256xf32>
    %c0_52 = arith.constant 0 : index
    %c0_53 = arith.constant 0 : index
    %101 = vector.load %arg5[%c0_52, %c0_53] : memref<256x128xf32, #tpu.memory_space<vmem>>, vector<256x128xf32>
    %cst_54 = arith.constant dense<0.000000e+00> : vector<8x128xf32>
    %102 = tpu.matmul %100, %101, %cst_54 {dimension_numbers = #tpu.dot_dimension_numbers<[1], [0], [0], [1], [0, 0, 1, 1], [], []>} : vector<8x256xf32>, vector<256x128xf32>, vector<8x128xf32> -> vector<8x128xf32>
    %c0_55 = arith.constant 0 : index
    %c0_56 = arith.constant 0 : index
    %103 = vector.load %arg6[%c0_55, %c0_56] : memref<8x128xf32, #tpu.memory_space<vmem>>, vector<8x128xf32>
    tpu.vector_store %arg6[%c0_55, %c0_56], %102 {strides = array<i32>} : memref<8x128xf32, #tpu.memory_space<vmem>>, vector<8x128xf32>,
    %c0_57 = arith.constant 0 : index
    %c0_58 = arith.constant 0 : index
    %104 = vector.load %arg7[%c0_57, %c0_58] : memref<8x128xf32, #tpu.memory_space<vmem>>, vector<8x128xf32>
    tpu.vector_store %arg7[%c0_57, %c0_58], %98 {strides = array<i32>} : memref<8x128xf32, #tpu.memory_space<vmem>>, vector<8x128xf32>,
    return
  }
}

</mosaic_0001>

<bundles_post_ra>
// kernel: tpu_custom_call.1
= control target key start
LH: loop header
LB: loop body
LE: loop exit
PB: predicated region body
PF: predicated region fallthrough
CT: control target
= control target key end

     0   :  { %13 = vsyncpa [#allocation7], 0  ;;  %s2911_s0 = inlined_call_operand.hbm [shape: s32[8], index: 0, kind: input, shape index: {}]   ;;  %s2912_s1 = inlined_call_operand.hbm [shape: f32[32,128], index: 1, kind: input, shape index: {}]   ;;  %s2913_s2 = inlined_call_operand.hbm [shape: f32[8,128], index: 2, kind: input, shape index: {}]   ;;  %s2914_s3 = inlined_call_operand.hbm [shape: f32[384,1152], index: 3, kind: input, shape index: {}]   ;;  %s2915_s4 = inlined_call_operand.hbm [shape: f32[256,384], index: 4, kind: input, shape index: {}]   ;;  %s2916_s5 = inlined_call_operand.hbm [shape: f32[256,128], index: 5, kind: input, shape index: {}]   ;;  %s2917_s6 = inlined_call_operand.hbm [shape: f32[8,128], index: 6, kind: output, shape index: {0}]   ;;  %s2918_s7 = inlined_call_operand.hbm [shape: f32[8,128], index: 7, kind: output, shape index: {1}]  }
   0x1   :  { %14 = vsyncpa [#allocation5], 0 }
   0x2   :  { %15 = vsyncpa [#allocation10], 0 }
   0x3   :  { %16 = vsyncpa [#allocation13], 0 }
   0x4   :  { %17 = vsyncpa [#allocation6], 0 }
   0x5   :  { %18 = vsyncpa [#allocation17], 0  ;;  %s2675_s24 = smov [#allocation9]   ;;  %s2676_s26 = smov [#allocation12]  }
   0x6   :  { %s45_s25 = sshll.u32 %s2675_s24, 4  ;;  %s66_s27 = sshll.u32 %s2676_s26, 4  ;;  %s46_s25 = int_to_ptr.vmem [resolvable:$true] %s45_s25  ;;  %s2733_s27 = int_to_ptr.vmem [resolvable:$true] %s66_s27 }
   0x7   :  { %s2499_s30 = scalar_lea.hbm %s2913_s2, 128 }
   0x8   :  { %p2500_p0 = scmp.ne.s32.totalorder %s2913_s2, %s2499_s30  ;;  %p2503_p1 = scmp.lt.u32.totalorder %s2499_s30, %s2913_s2 }
   0xa   :  { %p2505_p2 = pnand %p2503_p1, %p2500_p0 }
   0xc   :  { %2508 = shalt.err (!%p2505_p2)
}
   0xd   :  { %s2509_s12 = scalar_lea.vmem %s46_s25, 128  ;;  %p2514_p4 = scmp.lt.s32.totalorder %s46_s25, %s46_s25 }
   0xe   :  { %p2510_p3 = scmp.ne.s32.totalorder %s46_s25, %s2509_s12  ;;  %p2515_p5 = scmp.lt.s32.totalorder %s2509_s12, %s2509_s12 }
  0x10   :  { %p2516_p6 = por %p2515_p5, %p2514_p4 }
  0x12   :  { %p2517_p7 = pnand %p2516_p6, %p2510_p3 }
  0x14   :  { %2520 = shalt.err (!%p2517_p7)
}
  0x15   :  { %48 = dma.hbm_to_vmem [thread:$0]  %s2913_s2, 128, %s46_s25, [#allocation10]  }
  0x16   :  { %s2521_s17 = scalar_lea.hbm %s2915_s4, 12288 }
  0x17   :  { %p2522_p8 = scmp.ne.s32.totalorder %s2915_s4, %s2521_s17  ;;  %p2525_p9 = scmp.lt.u32.totalorder %s2521_s17, %s2915_s4 }
  0x19   :  { %p2527_p10 = pnand %p2525_p9, %p2522_p8 }
  0x1b   :  { %2530 = shalt.err (!%p2527_p10)
}
  0x1c   :  { %s2531_s22 = scalar_lea.vmem %s2733_s27, 12288  ;;  %p2536_p12 = scmp.lt.s32.totalorder %s2733_s27, %s2733_s27 }
  0x1d   :  { %p2532_p11 = scmp.ne.s32.totalorder %s2733_s27, %s2531_s22  ;;  %p2537_p13 = scmp.lt.s32.totalorder %s2531_s22, %s2531_s22 }
  0x1f   :  { %p2538_p0 = por %p2537_p13, %p2536_p12 }
  0x21   :  { %p2539_p1 = pnand %p2538_p0, %p2532_p11 }
  0x23   :  { %2542 = shalt.err (!%p2539_p1)
}
  0x24   :  { %s2677_s2 = smov 384   ;;  %s2678_s23 = smov 24  }
  0x25   :  { %72 = dma.hbm_to_vmem [thread:$0]  %s2915_s4, 12288, %s2733_s27, [#allocation13], %s2677_s2, %s2677_s2, %s2678_s23  }
  0x26   :  { %s2543_s29 = scalar_lea.hbm %s2911_s0, 16 }
  0x27   :  { %p2544_p2 = scmp.ne.s32.totalorder %s2911_s0, %s2543_s29  ;;  %p2547_p3 = scmp.lt.u32.totalorder %s2543_s29, %s2911_s0 }
  0x29   :  { %p2549_p4 = pnand %p2547_p3, %p2544_p2 }
  0x2b   :  { %2552 = shalt.err (!%p2549_p4)
}
  0x2c   :  { %s2679_s11 = smov [#allocation4]   ;;  %s2680_s4 = smov [#allocation8]  }
  0x2d   :  { %26 = dma.hbm_to_smem %s2911_s0, 16, %s2679_s11, [#allocation7]  }
  0x2e   :  { %s32_s27 = sshll.u32 %s2680_s4, 4  ;;  %s2553_s16 = scalar_lea.hbm %s2912_s1, 512  ;;  %s33_s27 = int_to_ptr.vmem [resolvable:$true] %s32_s27 }
  0x2f   :  { %p2554_p5 = scmp.ne.s32.totalorder %s2912_s1, %s2553_s16  ;;  %p2557_p6 = scmp.lt.u32.totalorder %s2553_s16, %s2912_s1 }
  0x31   :  { %p2559_p7 = pnand %p2557_p6, %p2554_p5 }
  0x33   :  { %2562 = shalt.err (!%p2559_p7)
}
  0x34   :  { %s2563_s21 = scalar_lea.vmem %s33_s27, 512  ;;  %p2568_p9 = scmp.lt.s32.totalorder %s33_s27, %s33_s27 }
  0x35   :  { %p2564_p8 = scmp.ne.s32.totalorder %s33_s27, %s2563_s21  ;;  %p2569_p10 = scmp.lt.s32.totalorder %s2563_s21, %s2563_s21 }
  0x37   :  { %p2570_p11 = por %p2569_p10, %p2568_p9 }
  0x39   :  { %p2571_p12 = pnand %p2570_p11, %p2564_p8 }
  0x3b   :  { %2574 = shalt.err (!%p2571_p12)
}
  0x3c   :  { %s2681_s0 = smov 128   ;;  %s2682_s22 = smov 8  }
  0x3d   :  { %38 = dma.hbm_to_vmem [thread:$0]  %s2912_s1, 512, %s33_s27, [#allocation5], %s2681_s0, %s2681_s0, %s2682_s22  }
  0x3e   :  { %s2683_s24 = smov [#allocation11]   ;;  %s2575_s29 = scalar_lea.hbm %s2914_s3, 55296 }
  0x3f   :  { %s54_s25 = sshll.u32 %s2683_s24, 4  ;;  %p2576_p13 = scmp.ne.s32.totalorder %s2914_s3, %s2575_s29  ;;  %s55_s25 = int_to_ptr.vmem [resolvable:$true] %s54_s25 }
  0x40   :  { %p2579_p0 = scmp.lt.u32.totalorder %s2575_s29, %s2914_s3 }
  0x42   :  { %p2581_p1 = pnand %p2579_p0, %p2576_p13 }
  0x44   :  { %2584 = shalt.err (!%p2581_p1)
}
  0x45   :  { %s2585_s11 = scalar_lea.vmem %s55_s25, 55296  ;;  %p2590_p3 = scmp.lt.s32.totalorder %s55_s25, %s55_s25 }
  0x46   :  { %p2586_p2 = scmp.ne.s32.totalorder %s55_s25, %s2585_s11  ;;  %p2591_p4 = scmp.lt.s32.totalorder %s2585_s11, %s2585_s11 }
  0x48   :  { %p2592_p5 = por %p2591_p4, %p2590_p3 }
  0x4a   :  { %p2593_p6 = pnand %p2592_p5, %p2586_p2 }
  0x4c   :  { %2596 = shalt.err (!%p2593_p6)
}
  0x4d   :  { %s2684_s1 = smov 1152   ;;  %s2685_s12 = smov 72  }
  0x4e   :  { %60 = dma.hbm_to_vmem [thread:$0]  %s2914_s3, 55296, %s55_s25, [#allocation10], %s2684_s1, %s2684_s1, %s2685_s12  }
  0x4f   :  { %s2686_s27 = smov [#allocation14]   ;;  %s2597_s17 = scalar_lea.hbm %s2916_s5, 4096 }
  0x50   :  { %s78_s14 = sshll.u32 %s2686_s27, 4  ;;  %p2598_p7 = scmp.ne.s32.totalorder %s2916_s5, %s2597_s17  ;;  %s79_s14 = int_to_ptr.vmem [resolvable:$true] %s78_s14 }
  0x51   :  { %p2601_p8 = scmp.lt.u32.totalorder %s2597_s17, %s2916_s5 }
  0x53   :  { %p2603_p9 = pnand %p2601_p8, %p2598_p7 }
  0x55   :  { %2606 = shalt.err (!%p2603_p9)
}
  0x56   :  { %s2607_s2 = scalar_lea.vmem %s79_s14, 4096  ;;  %p2612_p11 = scmp.lt.s32.totalorder %s79_s14, %s79_s14 }
  0x57   :  { %p2608_p10 = scmp.ne.s32.totalorder %s79_s14, %s2607_s2  ;;  %p2613_p12 = scmp.lt.s32.totalorder %s2607_s2, %s2607_s2 }
  0x59   :  { %p2614_p13 = por %p2613_p12, %p2612_p11 }
  0x5b   :  { %p2615_p0 = pnand %p2614_p13, %p2608_p10 }
  0x5d   :  { %2618 = shalt.err (!%p2615_p0)
}
  0x5e   :  { %84 = dma.hbm_to_vmem [thread:$0]  %s2916_s5, 4096, %s79_s14, [#allocation13], %s2681_s0, %s2681_s0, %s2682_s22  }
  0x5f   :  { %2663 = dma.done.wait [#allocation7], 16  }
  0x60   :  { %2664 = vsyncadd [#allocation7], 4294967280 }
  0x61   :  { %2665 = dma.done.wait [#allocation5], 512  }
  0x62   :  { %2666 = vsyncadd [#allocation5], 4294966784 }
  0x63   :  { %2667 = dma.done.wait [#allocation10], 55424  }
  0x64   :  { %2668 = vsyncadd [#allocation10], 4294911872 }
  0x65   :  { %2669 = dma.done.wait [#allocation13], 16384  }
  0x66   :  { %2670 = vsyncadd [#allocation13], 4294950912 }
  0x67   :  { %103 = sfence }
  0x68   :  { %v144_v0 = vld [vmem:[#allocation11 + $0x8] sm:$0xff]  ;;  %v153_v1 = vld [vmem:[#allocation11 + $0x50] sm:$0xff]  ;;  %v146_v2 = vld [vmem:[#allocation11 + $0x18] sm:$0xff]  ;;  %v2687_v12 = vmov 1.0   ;;  %s2819_s5 = sld [smem:[#allocation4]]  ;;  %s2821_s0 = sld [smem:[#allocation4 + $0x1]] }
  0x69   :  { %v1880_v3 = vpack.c.bf16 %v153_v1, %v144_v0  ;;  %v155_v4 = vld [vmem:[#allocation11 + $0x60] sm:$0xff]  ;;  %v152_v6 = vld [vmem:[#allocation11 + $0x48] sm:$0xff]  ;;  %v145_v9 = vld [vmem:[#allocation11 + $0x10] sm:$0xff]  ;;  %104 = vst [vmem:[#allocation2 + $0x10] sm:$0xff] %v2687_v12  ;;  %s2823_s22 = sld [smem:[#allocation4 + $0x2]]  ;;  %s2825_s24 = sld [smem:[#allocation4 + $0x3]] }
  0x6a   :  { %v143_v5 = vld [vmem:[#allocation11] sm:$0xff]  ;;  %v1976_v7 = vpack.c.bf16 %v155_v4, %v146_v2  ;;  %v154_v10 = vld [vmem:[#allocation11 + $0x58] sm:$0xff]  ;;  %v164_v15 = vld [vmem:[#allocation11 + $0xa8] sm:$0xff]  ;;  %s2827_s25 = sld [smem:[#allocation4 + $0x4]]  ;;  %s2829_s26 = sld [smem:[#allocation4 + $0x5]]  ;;  %vm2690_vm0 = vmmov 0  }
  0x6b   :  { %v1882_v8 = vpack.c.bf16 %v152_v6, %v143_v5  ;;  %v162_v11 = vld [vmem:[#allocation11 + $0x98] sm:$0xff]  ;;  %1881 = vmatprep.subr.bf16.mxu0 %v1880_v3  ;;  %v1978_v13 = vpack.c.bf16 %v154_v10, %v145_v9  ;;  %v171_v14 = vld [vmem:[#allocation11 + $0xe0] sm:$0xff]  ;;  %v173_v16 = vld [vmem:[#allocation11 + $0xf0] sm:$0xff]  ;;  %s2831_s28 = sld [smem:[#allocation4 + $0x6]]  ;;  %s2833_s29 = sld [smem:[#allocation4 + $0x7]] }
  0x6c   :  { %1977 = vmatprep.subr.bf16.mxu1 %v1976_v7  ;;  %v1884_v17 = vpack.c.bf16 %v171_v14, %v162_v11  ;;  %v1980_v18 = vpack.c.bf16 %v173_v16, %v164_v15  ;;  %v161_v19 = vld [vmem:[#allocation11 + $0x90] sm:$0xff]  ;;  %v170_v20 = vld [vmem:[#allocation11 + $0xd8] sm:$0xff]  ;;  %v163_v21 = vld [vmem:[#allocation11 + $0xa0] sm:$0xff]  ;;  %s2691_s4 = smov [#allocation16]  }
  0x6d   :  { %1883 = vmatpush1.bf16.msra.mxu0 %v1882_v8  ;;  %1979 = vmatpush1.bf16.msra.mxu1 %v1978_v13  ;;  %v1886_v22 = vpack.c.bf16 %v170_v20, %v161_v19  ;;  %v172_v23 = vld [vmem:[#allocation11 + $0xe8] sm:$0xff]  ;;  %v189_v25 = vld [vmem:[#allocation11 + $0x170] sm:$0xff]  ;;  %v182_v28 = vld [vmem:[#allocation11 + $0x138] sm:$0xff]  ;;  %s1688_s27 = sshll.u32 %s2691_s4, 4  ;;  %s1689_s27 = int_to_ptr.vmem [resolvable:$true] %s1688_s27 }
  0x6e   :  { %v180_v24 = vld [vmem:[#allocation11 + $0x128] sm:$0xff]  ;;  %1885 = vmatprep.subr.bf16.mxu0 %v1884_v17  ;;  %1981 = vmatprep.subr.bf16.mxu1 %v1980_v18  ;;  %v1982_v26 = vpack.c.bf16 %v172_v23, %v163_v21  ;;  %v191_v29 = vld [vmem:[#allocation11 + $0x180] sm:$0xff]  ;;  %v181_v33 = vld [vmem:[#allocation11 + $0x130] sm:$0xff]  ;;  %s107_s30 = scalar_lea.vmem [#allocation8], %s2819_s5  ;;  %s111_s8 = scalar_lea.vmem [#allocation8], %s2821_s0 }
  0x6f   :  { %v1888_v27 = vpack.c.bf16 %v189_v25, %v180_v24  ;;  %v179_v30 = vld [vmem:[#allocation11 + $0x120] sm:$0xff]  ;;  %v1984_v31 = vpack.c.bf16 %v191_v29, %v182_v28  ;;  %v188_v32 = vld [vmem:[#allocation11 + $0x168] sm:$0xff]  ;;  %v190_v34 = vld [vmem:[#allocation11 + $0x178] sm:$0xff]  ;;  %s115_s9 = scalar_lea.vmem [#allocation8], %s2823_s22  ;;  %s119_s10 = scalar_lea.vmem [#allocation8], %s2825_s24 }
  0x70   :  { %v1890_v35 = vpack.c.bf16 %v188_v32, %v179_v30  ;;  %v198_v36 = vld [vmem:[#allocation11 + $0x1b8] sm:$0xff]  ;;  %v207_v37 = vld [vmem:[#allocation11 + $0x200] sm:$0xff]  ;;  %v200_v38 = vld [vmem:[#allocation11 + $0x1c8] sm:$0xff]  ;;  %v1986_v39 = vpack.c.bf16 %v190_v34, %v181_v33  ;;  %s123_s11 = scalar_lea.vmem [#allocation8], %s2827_s25  ;;  %s127_s1 = scalar_lea.vmem [#allocation8], %s2829_s26 }
  0x71   :  { %1887 = vmatpush1.bf16.msra.mxu0 %v1886_v22  ;;  %1983 = vmatpush1.bf16.msra.mxu1 %v1982_v26  ;;  %v1892_v40 = vpack.c.bf16 %v207_v37, %v198_v36  ;;  %v209_v41 = vld [vmem:[#allocation11 + $0x210] sm:$0xff]  ;;  %v206_v43 = vld [vmem:[#allocation11 + $0x1f8] sm:$0xff]  ;;  %v199_v45 = vld [vmem:[#allocation11 + $0x1c0] sm:$0xff]  ;;  %s131_s12 = scalar_lea.vmem [#allocation8], %s2831_s28  ;;  %s135_s13 = scalar_lea.vmem [#allocation8], %s2833_s29 }
  0x72   :  { %1889 = vmatprep.subr.bf16.mxu0 %v1888_v27  ;;  %v197_v42 = vld [vmem:[#allocation11 + $0x1b0] sm:$0xff]  ;;  %1985 = vmatprep.subr.bf16.mxu1 %v1984_v31  ;;  %v1988_v44 = vpack.c.bf16 %v209_v41, %v200_v38  ;;  %v208_v46 = vld [vmem:[#allocation11 + $0x208] sm:$0xff]  ;;  %v218_v49 = vld [vmem:[#allocation11 + $0x258] sm:$0xff]  ;;  %s2619_s14 = scalar_lea.vmem %s1689_s27, 128  ;;  %p2624_p2 = scmp.lt.s32.totalorder %s1689_s27, %s1689_s27 }
  0x73   :  { %v216_v47 = vld [vmem:[#allocation11 + $0x248] sm:$0xff]  ;;  %v225_v48 = vld [vmem:[#allocation11 + $0x290] sm:$0xff]  ;;  %v227_v50 = vld [vmem:[#allocation11 + $0x2a0] sm:$0xff]  ;;  %v1894_v51 = vpack.c.bf16 %v206_v43, %v197_v42  ;;  %v1990_v52 = vpack.c.bf16 %v208_v46, %v199_v45  ;;  %p2620_p1 = scmp.ne.s32.totalorder %s1689_s27, %s2619_s14  ;;  %p2625_p3 = scmp.lt.s32.totalorder %s2619_s14, %s2619_s14 }
  0x74   :  { %v1896_v53 = vpack.c.bf16 %v225_v48, %v216_v47  ;;  %v215_v54 = vld [vmem:[#allocation11 + $0x240] sm:$0xff]  ;;  %v224_v55 = vld [vmem:[#allocation11 + $0x288] sm:$0xff]  ;;  %v217_v56 = vld [vmem:[#allocation11 + $0x250] sm:$0xff]  ;;  %v1992_v57 = vpack.c.bf16 %v227_v50, %v218_v49 }
  0x75   :  { %1891 = vmatpush1.bf16.msra.mxu0 %v1890_v35  ;;  %1987 = vmatpush1.bf16.msra.mxu1 %v1986_v39  ;;  %v226_v58 = vld [vmem:[#allocation11 + $0x298] sm:$0xff]  ;;  %v243_v60 = vld [vmem:[#allocation11 + $0x320] sm:$0xff]  ;;  %v236_v61 = vld [vmem:[#allocation11 + $0x2e8] sm:$0xff]  ;;  %v1898_v63 = vpack.c.bf16 %v224_v55, %v215_v54  ;;  %p2626_p4 = por %p2625_p3, %p2624_p2 }
  0x76   :  { %1893 = vmatprep.subr.bf16.mxu0 %v1892_v40  ;;  %1989 = vmatprep.subr.bf16.mxu1 %v1988_v44  ;;  %v234_v59 = vld [vmem:[#allocation11 + $0x2d8] sm:$0xff]  ;;  %v245_v62 = vld [vmem:[#allocation11 + $0x330] sm:$0xff]  ;;  %v1994_v0 = vpack.c.bf16 %v226_v58, %v217_v56  ;;  %v235_v4 = vld [vmem:[#allocation11 + $0x2e0] sm:$0xff] }
  0x77   :  { %v1900_v1 = vpack.c.bf16 %v243_v60, %v234_v59  ;;  %v233_v2 = vld [vmem:[#allocation11 + $0x2d0] sm:$0xff]  ;;  %v242_v3 = vld [vmem:[#allocation11 + $0x318] sm:$0xff]  ;;  %v1996_v5 = vpack.c.bf16 %v245_v62, %v236_v61  ;;  %v244_v6 = vld [vmem:[#allocation11 + $0x328] sm:$0xff]  ;;  %p2627_p5 = pnand %p2626_p4, %p2620_p1 }
  0x78   :  { %v252_v7 = vld [vmem:[#allocation11 + $0x368] sm:$0xff]  ;;  %v261_v8 = vld [vmem:[#allocation11 + $0x3b0] sm:$0xff]  ;;  %v254_v9 = vld [vmem:[#allocation11 + $0x378] sm:$0xff]  ;;  %v1902_v11 = vpack.c.bf16 %v242_v3, %v233_v2  ;;  %v1998_v13 = vpack.c.bf16 %v244_v6, %v235_v4 }
  0x79   :  { %1895 = vmatpush1.bf16.msra.mxu0 %v1894_v51  ;;  %1991 = vmatpush1.bf16.msra.mxu1 %v1990_v52  ;;  %v263_v10 = vld [vmem:[#allocation11 + $0x3c0] sm:$0xff]  ;;  %v1904_v14 = vpack.c.bf16 %v261_v8, %v252_v7  ;;  %v260_v16 = vld [vmem:[#allocation11 + $0x3a8] sm:$0xff]  ;;  %v253_v17 = vld [vmem:[#allocation11 + $0x370] sm:$0xff] }
  0x7a   :  { %1897 = vmatprep.subr.bf16.mxu0 %v1896_v53  ;;  %1993 = vmatprep.subr.bf16.mxu1 %v1992_v57  ;;  %v251_v15 = vld [vmem:[#allocation11 + $0x360] sm:$0xff]  ;;  %v2000_v18 = vpack.c.bf16 %v263_v10, %v254_v9  ;;  %v262_v19 = vld [vmem:[#allocation11 + $0x3b8] sm:$0xff]  ;;  %v272_v22 = vld [vmem:[#allocation11 + $0x408] sm:$0xff] }
  0x7b   :  { %v270_v20 = vld [vmem:[#allocation11 + $0x3f8] sm:$0xff]  ;;  %v279_v21 = vld [vmem:[#allocation11 + $0x440] sm:$0xff]  ;;  %v281_v23 = vld [vmem:[#allocation11 + $0x450] sm:$0xff]  ;;  %v1906_v24 = vpack.c.bf16 %v260_v16, %v251_v15  ;;  %v2002_v25 = vpack.c.bf16 %v262_v19, %v253_v17 }
  0x7c   :  { %v1908_v26 = vpack.c.bf16 %v279_v21, %v270_v20  ;;  %v269_v27 = vld [vmem:[#allocation11 + $0x3f0] sm:$0xff]  ;;  %v278_v28 = vld [vmem:[#allocation11 + $0x438] sm:$0xff]  ;;  %v271_v29 = vld [vmem:[#allocation11 + $0x400] sm:$0xff]  ;;  %v2004_v30 = vpack.c.bf16 %v281_v23, %v272_v22 }
  0x7d   :  { %1899 = vmatpush1.bf16.msra.mxu0 %v1898_v63  ;;  %1995 = vmatpush1.bf16.msra.mxu1 %v1994_v0  ;;  %v280_v31 = vld [vmem:[#allocation11 + $0x448] sm:$0xff]  ;;  %v297_v33 = vld [vmem:[#allocation11 + $0x4d0] sm:$0xff]  ;;  %v290_v34 = vld [vmem:[#allocation11 + $0x498] sm:$0xff]  ;;  %v1910_v36 = vpack.c.bf16 %v278_v28, %v269_v27 }
  0x7e   :  { %1901 = vmatprep.subr.bf16.mxu0 %v1900_v1  ;;  %1997 = vmatprep.subr.bf16.mxu1 %v1996_v5  ;;  %v288_v32 = vld [vmem:[#allocation11 + $0x488] sm:$0xff]  ;;  %v299_v35 = vld [vmem:[#allocation11 + $0x4e0] sm:$0xff]  ;;  %v2006_v37 = vpack.c.bf16 %v280_v31, %v271_v29  ;;  %v289_v41 = vld [vmem:[#allocation11 + $0x490] sm:$0xff] }
  0x7f   :  { %v1912_v38 = vpack.c.bf16 %v297_v33, %v288_v32  ;;  %v287_v39 = vld [vmem:[#allocation11 + $0x480] sm:$0xff]  ;;  %v296_v40 = vld [vmem:[#allocation11 + $0x4c8] sm:$0xff]  ;;  %v2008_v42 = vpack.c.bf16 %v299_v35, %v290_v34  ;;  %v298_v43 = vld [vmem:[#allocation11 + $0x4d8] sm:$0xff] }
  0x80   :  { %v306_v44 = vld [vmem:[#allocation11 + $0x518] sm:$0xff]  ;;  %v315_v45 = vld [vmem:[#allocation11 + $0x560] sm:$0xff]  ;;  %v308_v46 = vld [vmem:[#allocation11 + $0x528] sm:$0xff]  ;;  %v1914_v48 = vpack.c.bf16 %v296_v40, %v287_v39  ;;  %v2010_v49 = vpack.c.bf16 %v298_v43, %v289_v41 }
  0x81   :  { %1903 = vmatpush1.bf16.msra.mxu0 %v1902_v11  ;;  %1999 = vmatpush1.bf16.msra.mxu1 %v1998_v13  ;;  %v317_v47 = vld [vmem:[#allocation11 + $0x570] sm:$0xff]  ;;  %v1916_v50 = vpack.c.bf16 %v315_v45, %v306_v44  ;;  %v314_v52 = vld [vmem:[#allocation11 + $0x558] sm:$0xff]  ;;  %v307_v53 = vld [vmem:[#allocation11 + $0x520] sm:$0xff] }
  0x82   :  { %1905 = vmatprep.subr.bf16.mxu0 %v1904_v14  ;;  %2001 = vmatprep.subr.bf16.mxu1 %v2000_v18  ;;  %v305_v51 = vld [vmem:[#allocation11 + $0x510] sm:$0xff]  ;;  %v2012_v54 = vpack.c.bf16 %v317_v47, %v308_v46  ;;  %v316_v55 = vld [vmem:[#allocation11 + $0x568] sm:$0xff]  ;;  %v326_v58 = vld [vmem:[#allocation11 + $0x5b8] sm:$0xff] }
  0x83   :  { %v324_v56 = vld [vmem:[#allocation11 + $0x5a8] sm:$0xff]  ;;  %v333_v57 = vld [vmem:[#allocation11 + $0x5f0] sm:$0xff]  ;;  %v335_v59 = vld [vmem:[#allocation11 + $0x600] sm:$0xff]  ;;  %v1918_v60 = vpack.c.bf16 %v314_v52, %v305_v51  ;;  %v2014_v61 = vpack.c.bf16 %v316_v55, %v307_v53 }
  0x84   :  { %v1920_v62 = vpack.c.bf16 %v333_v57, %v324_v56  ;;  %v323_v63 = vld [vmem:[#allocation11 + $0x5a0] sm:$0xff]  ;;  %v332_v0 = vld [vmem:[#allocation11 + $0x5e8] sm:$0xff]  ;;  %v325_v1 = vld [vmem:[#allocation11 + $0x5b0] sm:$0xff]  ;;  %v2016_v2 = vpack.c.bf16 %v335_v59, %v326_v58 }
  0x85   :  { %1907 = vmatpush1.bf16.msra.mxu0 %v1906_v24  ;;  %2003 = vmatpush1.bf16.msra.mxu1 %v2002_v25  ;;  %v334_v3 = vld [vmem:[#allocation11 + $0x5f8] sm:$0xff]  ;;  %v351_v5 = vld [vmem:[#allocation11 + $0x680] sm:$0xff]  ;;  %v344_v6 = vld [vmem:[#allocation11 + $0x648] sm:$0xff]  ;;  %v1922_v8 = vpack.c.bf16 %v332_v0, %v323_v63 }
  0x86   :  { %1909 = vmatprep.subr.bf16.mxu0 %v1908_v26  ;;  %2005 = vmatprep.subr.bf16.mxu1 %v2004_v30  ;;  %v342_v4 = vld [vmem:[#allocation11 + $0x638] sm:$0xff]  ;;  %v353_v7 = vld [vmem:[#allocation11 + $0x690] sm:$0xff]  ;;  %v2018_v11 = vpack.c.bf16 %v334_v3, %v325_v1  ;;  %v343_v14 = vld [vmem:[#allocation11 + $0x640] sm:$0xff] }
  0x87   :  { %v341_v9 = vld [vmem:[#allocation11 + $0x630] sm:$0xff]  ;;  %v350_v10 = vld [vmem:[#allocation11 + $0x678] sm:$0xff]  ;;  %v1924_v13 = vpack.c.bf16 %v351_v5, %v342_v4  ;;  %v352_v15 = vld [vmem:[#allocation11 + $0x688] sm:$0xff]  ;;  %v2020_v17 = vpack.c.bf16 %v353_v7, %v344_v6 }
  0x88   :  { %v360_v16 = vld [vmem:[#allocation11 + $0x6c8] sm:$0xff]  ;;  %v369_v18 = vld [vmem:[#allocation11 + $0x710] sm:$0xff]  ;;  %v362_v19 = vld [vmem:[#allocation11 + $0x6d8] sm:$0xff]  ;;  %v1926_v24 = vpack.c.bf16 %v350_v10, %v341_v9  ;;  %v2022_v31 = vpack.c.bf16 %v352_v15, %v343_v14 }
  0x89   :  { %1911 = vmatpush1.bf16.msra.mxu0 %v1910_v36  ;;  %2007 = vmatpush1.bf16.msra.mxu1 %v2006_v37  ;;  %v2835_v20 = vld [vmem:[#allocation9] sm:$0xff]  ;;  %v371_v21 = vld [vmem:[#allocation11 + $0x720] sm:$0xff]  ;;  %v368_v23 = vld [vmem:[#allocation11 + $0x708] sm:$0xff]  ;;  %v1928_v32 = vpack.c.bf16 %v369_v18, %v360_v16 }
  0x8a   :  { %1913 = vmatprep.subr.bf16.mxu0 %v1912_v38  ;;  %2009 = vmatprep.subr.bf16.mxu1 %v2008_v42  ;;  %v359_v22 = vld [vmem:[#allocation11 + $0x6c0] sm:$0xff]  ;;  %139 = vst [vmem:[#allocation2 + $0x8] sm:$0xff] %v2835_v20  ;;  %v361_v25 = vld [vmem:[#allocation11 + $0x6d0] sm:$0xff]  ;;  %v370_v26 = vld [vmem:[#allocation11 + $0x718] sm:$0xff]  ;;  %v2024_v36 = vpack.c.bf16 %v371_v21, %v362_v19 }
  0x8b   :  { %639 = vmatprep.mubr.f32.mxu0 %v2835_v20  ;;  %781 = vmatprep.mubr.f32.mxu1 %v2835_v20  ;;  %v378_v27 = vld [vmem:[#allocation11 + $0x758] sm:$0xff]  ;;  %v387_v28 = vld [vmem:[#allocation11 + $0x7a0] sm:$0xff]  ;;  %v380_v40 = vld [vmem:[#allocation11 + $0x768] sm:$0xff]  ;;  %v1930_v42 = vpack.c.bf16 %v368_v23, %v359_v22  ;;  %v2026_v43 = vpack.c.bf16 %v370_v26, %v361_v25 }
  0x8c   :  { %v108_v29 = vld [vmem:[%s107_s30] sm:$0x1]  ;;  %v389_v41 = vld [vmem:[#allocation11 + $0x7b0] sm:$0xff]  ;;  %v1932_v44 = vpack.c.bf16 %v387_v28, %v378_v27  ;;  %v386_v46 = vld [vmem:[#allocation11 + $0x798] sm:$0xff] }
  0x8d   :  { %1915 = vmatpush1.bf16.msra.mxu0 %v1914_v48  ;;  %2011 = vmatpush1.bf16.msra.mxu1 %v2010_v49  ;;  %v112_v30 = vld [vmem:[%s111_s8] sm:$0x1]  ;;  %109 = vst [vmem:[#allocation2] sm:$0x1] %v108_v29  ;;  %v377_v45 = vld [vmem:[#allocation11 + $0x750] sm:$0xff]  ;;  %v2028_v48 = vpack.c.bf16 %v389_v41, %v380_v40  ;;  %v388_v49 = vld [vmem:[#allocation11 + $0x7a8] sm:$0xff] }
  0x8e   :  { %1917 = vmatprep.subr.bf16.mxu0 %v1916_v50  ;;  %2013 = vmatprep.subr.bf16.mxu1 %v2012_v54  ;;  %113 = vst [vmem:[#allocation2 + $0x1] sm:$0x1] %v112_v30  ;;  %v116_v33 = vld [vmem:[%s115_s9] sm:$0x1]  ;;  %v396_v50 = vld [vmem:[#allocation11 + $0x7e8] sm:$0xff]  ;;  %v405_v51 = vld [vmem:[#allocation11 + $0x830] sm:$0xff]  ;;  %v1934_v54 = vpack.c.bf16 %v386_v46, %v377_v45 }
  0x8f   :  { %v120_v34 = vld [vmem:[%s119_s10] sm:$0x1]  ;;  %117 = vst [vmem:[#allocation2 + $0x2] sm:$0x1] %v116_v33  ;;  %v398_v52 = vld [vmem:[#allocation11 + $0x7f8] sm:$0xff]  ;;  %v1936_v56 = vpack.c.bf16 %v405_v51, %v396_v50  ;;  %v404_v58 = vld [vmem:[#allocation11 + $0x828] sm:$0xff] }
  0x90   :  { %v124_v35 = vld [vmem:[%s123_s11] sm:$0x1]  ;;  %121 = vst [vmem:[#allocation2 + $0x3] sm:$0x1] %v120_v34  ;;  %v397_v59 = vld [vmem:[#allocation11 + $0x7f0] sm:$0xff]  ;;  %v416_v0 = vld [vmem:[#allocation11 + $0x888] sm:$0xff] }
  0x91   :  { %1919 = vmatpush1.bf16.msra.mxu0 %v1918_v60  ;;  %2015 = vmatpush1.bf16.msra.mxu1 %v2014_v61  ;;  %125 = vst [vmem:[#allocation2 + $0x4] sm:$0x1] %v124_v35  ;;  %v128_v37 = vld [vmem:[%s127_s1] sm:$0x1]  ;;  %v406_v61 = vld [vmem:[#allocation11 + $0x838] sm:$0xff]  ;;  %v425_v1 = vld [vmem:[#allocation11 + $0x8d0] sm:$0xff] }
  0x92   :  { %1921 = vmatprep.subr.bf16.mxu0 %v1920_v62  ;;  %2017 = vmatprep.subr.bf16.mxu1 %v2016_v2  ;;  %v132_v38 = vld [vmem:[%s131_s12] sm:$0x1]  ;;  %129 = vst [vmem:[#allocation2 + $0x5] sm:$0x1] %v128_v37  ;;  %v414_v62 = vld [vmem:[#allocation11 + $0x878] sm:$0xff]  ;;  %v2034_v3 = vpack.c.bf16 %v406_v61, %v397_v59  ;;  %v413_v5 = vld [vmem:[#allocation11 + $0x870] sm:$0xff] }
  0x93   :  { %v136_v39 = vld [vmem:[%s135_s13] sm:$0x1]  ;;  %133 = vst [vmem:[#allocation2 + $0x6] sm:$0x1] %v132_v38  ;;  %v422_v6 = vld [vmem:[#allocation11 + $0x8b8] sm:$0xff]  ;;  %v424_v9 = vld [vmem:[#allocation11 + $0x8c8] sm:$0xff] }
  0x94   :  { %137 = vst [vmem:[#allocation2 + $0x7] sm:$0x1] %v136_v39  ;;  %v379_v47 = vld [vmem:[#allocation11 + $0x760] sm:$0xff]  ;;  %v432_v10 = vld [vmem:[#allocation11 + $0x908] sm:$0xff]  ;;  %v1942_v15 = vpack.c.bf16 %v422_v6, %v413_v5  ;;  %v433_v21 = vld [vmem:[#allocation11 + $0x910] sm:$0xff]  ;;  %v2688_v51 = vmov 0.0  }
  0x95   :  { %1923 = vmatpush1.bf16.msra.mxu0 %v1922_v8  ;;  %2019 = vmatpush1.bf16.msra.mxu1 %v2018_v11  ;;  %v407_v53 = vld [vmem:[#allocation11 + $0x840] sm:$0xff]  ;;  %v2030_v55 = vpack.c.bf16 %v388_v49, %v379_v47  ;;  %v2036_v8 = vpack.c.bf16 %v425_v1, %v416_v0  ;;  %v441_v11 = vld [vmem:[#allocation11 + $0x950] sm:$0xff]  ;;  %v440_v19 = vld [vmem:[#allocation11 + $0x948] sm:$0xff] }
  0x96   :  { %1925 = vmatprep.subr.bf16.mxu0 %v1924_v13  ;;  %2021 = vmatprep.subr.bf16.mxu1 %v2020_v17  ;;  %v395_v57 = vld [vmem:[#allocation11 + $0x7e0] sm:$0xff]  ;;  %v2032_v60 = vpack.c.bf16 %v407_v53, %v398_v52  ;;  %v434_v13 = vld [vmem:[#allocation11 + $0x918] sm:$0xff]  ;;  %v1944_v17 = vpack.c.bf16 %v441_v11, %v432_v10  ;;  %v452_v26 = vld [vmem:[#allocation11 + $0x9a8] sm:$0xff] }
  0x97   :  { %v423_v63 = vld [vmem:[#allocation11 + $0x8c0] sm:$0xff]  ;;  %v1938_v2 = vpack.c.bf16 %v404_v58, %v395_v57  ;;  %v442_v23 = vld [vmem:[#allocation11 + $0x958] sm:$0xff]  ;;  %v461_v27 = vld [vmem:[#allocation11 + $0x9f0] sm:$0xff] }
  0x98   :  { %v1940_v4 = vpack.c.bf16 %v423_v63, %v414_v62  ;;  %v415_v7 = vld [vmem:[#allocation11 + $0x880] sm:$0xff]  ;;  %v2042_v30 = vpack.c.bf16 %v442_v23, %v433_v21  ;;  %v458_v33 = vld [vmem:[#allocation11 + $0x9d8] sm:$0xff]  ;;  %v2044_v35 = vpack.c.bf16 %v461_v27, %v452_v26  ;;  %v468_v37 = vld [vmem:[#allocation11 + $0xa28] sm:$0xff] }
  0x99   :  { %1927 = vmatpush1.bf16.msra.mxu0 %v1926_v24  ;;  %2023 = vmatpush1.bf16.msra.mxu1 %v2022_v31  ;;  %v443_v14 = vld [vmem:[#allocation11 + $0x960] sm:$0xff]  ;;  %v2038_v16 = vpack.c.bf16 %v424_v9, %v415_v7  ;;  %v450_v24 = vld [vmem:[#allocation11 + $0x998] sm:$0xff]  ;;  %v477_v38 = vld [vmem:[#allocation11 + $0xa70] sm:$0xff] }
  0x9a   :  { %1929 = vmatprep.subr.bf16.mxu0 %v1928_v32  ;;  %2025 = vmatprep.subr.bf16.mxu1 %v2024_v36  ;;  %v431_v18 = vld [vmem:[#allocation11 + $0x900] sm:$0xff]  ;;  %v2040_v22 = vpack.c.bf16 %v443_v14, %v434_v13  ;;  %v449_v32 = vld [vmem:[#allocation11 + $0x990] sm:$0xff]  ;;  %v460_v36 = vld [vmem:[#allocation11 + $0x9e8] sm:$0xff] }
  0x9b   :  { %v459_v25 = vld [vmem:[#allocation11 + $0x9e0] sm:$0xff]  ;;  %v1946_v29 = vpack.c.bf16 %v440_v19, %v431_v18  ;;  %v470_v39 = vld [vmem:[#allocation11 + $0xa38] sm:$0xff]  ;;  %v1950_v41 = vpack.c.bf16 %v458_v33, %v449_v32  ;;  %v476_v45 = vld [vmem:[#allocation11 + $0xa68] sm:$0xff] }
  0x9c   :  { %v2848_v28 = vld [vmem:[#allocation2] sm:$0xff]  ;;  %v1948_v31 = vpack.c.bf16 %v459_v25, %v450_v24  ;;  %v469_v46 = vld [vmem:[#allocation11 + $0xa30] sm:$0xff]  ;;  %v486_v49 = vld [vmem:[#allocation11 + $0xab8] sm:$0xff] }
  0x9d   :  { %1931 = vmatpush1.bf16.msra.mxu0 %v1930_v42  ;;  %2027 = vmatpush1.bf16.msra.mxu1 %v2026_v43  ;;  %v451_v34 = vld [vmem:[#allocation11 + $0x9a0] sm:$0xff]  ;;  %v1952_v43 = vpack.c.bf16 %v477_v38, %v468_v37  ;;  %v488_v52 = vld [vmem:[#allocation11 + $0xac8] sm:$0xff]  ;;  %v497_v53 = vld [vmem:[#allocation11 + $0xb10] sm:$0xff] }
  0x9e   :  { %1933 = vmatprep.subr.bf16.mxu0 %v1932_v44  ;;  %2029 = vmatprep.subr.bf16.mxu1 %v2028_v48  ;;  %v479_v40 = vld [vmem:[#allocation11 + $0xa80] sm:$0xff]  ;;  %v2046_v42 = vpack.c.bf16 %v460_v36, %v451_v34  ;;  %v478_v48 = vld [vmem:[#allocation11 + $0xa78] sm:$0xff]  ;;  %v485_v57 = vld [vmem:[#allocation11 + $0xab0] sm:$0xff] }
  0x9f   :  { %v467_v44 = vld [vmem:[#allocation11 + $0xa20] sm:$0xff]  ;;  %v2048_v47 = vpack.c.bf16 %v479_v40, %v470_v39  ;;  %v494_v58 = vld [vmem:[#allocation11 + $0xaf8] sm:$0xff]  ;;  %v496_v61 = vld [vmem:[#allocation11 + $0xb08] sm:$0xff] }
  0xa0   :  { %v495_v50 = vld [vmem:[#allocation11 + $0xb00] sm:$0xff]  ;;  %v504_v62 = vld [vmem:[#allocation11 + $0xb48] sm:$0xff]  ;;  %v513_v63 = vld [vmem:[#allocation11 + $0xb90] sm:$0xff] }
  0xa1   :  { %1935 = vmatpush1.bf16.msra.mxu0 %v1934_v54  ;;  %2031 = vmatpush1.bf16.msra.mxu1 %v2030_v55  ;;  %v1954_v54 = vpack.c.bf16 %v476_v45, %v467_v44  ;;  %v2050_v55 = vpack.c.bf16 %v478_v48, %v469_v46  ;;  %v487_v59 = vld [vmem:[#allocation11 + $0xac0] sm:$0xff]  ;;  %v506_v0 = vld [vmem:[#allocation11 + $0xb58] sm:$0xff]  ;;  %v512_v6 = vld [vmem:[#allocation11 + $0xb88] sm:$0xff] }
  0xa2   :  { %1937 = vmatprep.subr.bf16.mxu0 %v1936_v56  ;;  %2033 = vmatprep.subr.bf16.mxu1 %v2032_v60  ;;  %v1956_v56 = vpack.c.bf16 %v495_v50, %v486_v49  ;;  %v2052_v60 = vpack.c.bf16 %v497_v53, %v488_v52  ;;  %v515_v1 = vld [vmem:[#allocation11 + $0xba0] sm:$0xff]  ;;  %v505_v7 = vld [vmem:[#allocation11 + $0xb50] sm:$0xff]  ;;  %v514_v9 = vld [vmem:[#allocation11 + $0xb98] sm:$0xff] }
  0xa3   :  { %v503_v5 = vld [vmem:[#allocation11 + $0xb40] sm:$0xff]  ;;  %v522_v10 = vld [vmem:[#allocation11 + $0xbd8] sm:$0xff]  ;;  %v524_v13 = vld [vmem:[#allocation11 + $0xbe8] sm:$0xff] }
  0xa4   :  { %v531_v11 = vld [vmem:[#allocation11 + $0xc20] sm:$0xff]  ;;  %v533_v14 = vld [vmem:[#allocation11 + $0xc30] sm:$0xff]  ;;  %v530_v19 = vld [vmem:[#allocation11 + $0xc18] sm:$0xff] }
  0xa5   :  { %1939 = vmatpush1.bf16.msra.mxu0 %v1938_v2  ;;  %2035 = vmatpush1.bf16.msra.mxu1 %v2034_v3  ;;  %v1958_v2 = vpack.c.bf16 %v494_v58, %v485_v57  ;;  %v2054_v3 = vpack.c.bf16 %v496_v61, %v487_v59  ;;  %v521_v18 = vld [vmem:[#allocation11 + $0xbd0] sm:$0xff]  ;;  %v523_v21 = vld [vmem:[#allocation11 + $0xbe0] sm:$0xff]  ;;  %v532_v23 = vld [vmem:[#allocation11 + $0xc28] sm:$0xff] }
  0xa6   :  { %1941 = vmatprep.subr.bf16.mxu0 %v1940_v4  ;;  %2037 = vmatprep.subr.bf16.mxu1 %v2036_v8  ;;  %v1960_v4 = vpack.c.bf16 %v513_v63, %v504_v62  ;;  %v2056_v8 = vpack.c.bf16 %v515_v1, %v506_v0  ;;  %v540_v24 = vld [vmem:[#allocation11 + $0xc68] sm:$0xff]  ;;  %v549_v25 = vld [vmem:[#allocation11 + $0xcb0] sm:$0xff]  ;;  %v542_v26 = vld [vmem:[#allocation11 + $0xc78] sm:$0xff] }
  0xa7   :  { %v551_v27 = vld [vmem:[#allocation11 + $0xcc0] sm:$0xff]  ;;  %v548_v33 = vld [vmem:[#allocation11 + $0xca8] sm:$0xff]  ;;  %v541_v34 = vld [vmem:[#allocation11 + $0xc70] sm:$0xff] }
  0xa8   :  { %v539_v32 = vld [vmem:[#allocation11 + $0xc60] sm:$0xff]  ;;  %v550_v36 = vld [vmem:[#allocation11 + $0xcb8] sm:$0xff]  ;;  %v560_v39 = vld [vmem:[#allocation11 + $0xd08] sm:$0xff] }
  0xa9   :  { %1943 = vmatpush1.bf16.msra.mxu0 %v1942_v15  ;;  %2039 = vmatpush1.bf16.msra.mxu1 %v2038_v16  ;;  %v1962_v15 = vpack.c.bf16 %v512_v6, %v503_v5  ;;  %v2058_v16 = vpack.c.bf16 %v514_v9, %v505_v7  ;;  %v558_v37 = vld [vmem:[#allocation11 + $0xcf8] sm:$0xff]  ;;  %v567_v38 = vld [vmem:[#allocation11 + $0xd40] sm:$0xff]  ;;  %v569_v40 = vld [vmem:[#allocation11 + $0xd50] sm:$0xff] }
  0xaa   :  { %1945 = vmatprep.subr.bf16.mxu0 %v1944_v17  ;;  %2041 = vmatprep.subr.bf16.mxu1 %v2040_v22  ;;  %v1964_v17 = vpack.c.bf16 %v531_v11, %v522_v10  ;;  %v2060_v22 = vpack.c.bf16 %v533_v14, %v524_v13  ;;  %v557_v44 = vld [vmem:[#allocation11 + $0xcf0] sm:$0xff]  ;;  %v566_v45 = vld [vmem:[#allocation11 + $0xd38] sm:$0xff]  ;;  %v559_v46 = vld [vmem:[#allocation11 + $0xd00] sm:$0xff] }
  0xab   :  { %v568_v48 = vld [vmem:[#allocation11 + $0xd48] sm:$0xff]  ;;  %v157_v50 = vld [vmem:[#allocation11 + $0x70] sm:$0xff]  ;;  %v1974_v52 = vpack.c.bf16 %v566_v45, %v557_v44  ;;  %v166_v57 = vld [vmem:[#allocation11 + $0xb8] sm:$0xff] }
  0xac   :  { %640 = vmatmul.mubr.f32.vlgmr.msra.gmra.mrb[0].mxu0 %v2848_v28  ;;  %782 = vmatmul.mubr.f32.vlgmr.msra.gmra.mrb[0].mxu1 %v2848_v28  ;;  %v148_v49 = vld [vmem:[#allocation11 + $0x28] sm:$0xff]  ;;  %v2070_v53 = vpack.c.bf16 %v568_v48, %v559_v46  ;;  %v175_v58 = vld [vmem:[#allocation11 + $0x100] sm:$0xff]  ;;  %v165_v61 = vld [vmem:[#allocation11 + $0xb0] sm:$0xff] }
  0xad   :  { %1947 = vmatpush1.bf16.msra.mxu0 %v1946_v29  ;;  %2043 = vmatpush1.bf16.msra.mxu1 %v2042_v30  ;;  %v1966_v29 = vpack.c.bf16 %v530_v19, %v521_v18  ;;  %v2062_v30 = vpack.c.bf16 %v532_v23, %v523_v21  ;;  %v174_v62 = vld [vmem:[#allocation11 + $0xf8] sm:$0xff]  ;;  %v184_v63 = vld [vmem:[#allocation11 + $0x148] sm:$0xff]  ;;  %v193_v0 = vld [vmem:[#allocation11 + $0x190] sm:$0xff] }
  0xae   :  { %1949 = vmatprep.subr.bf16.mxu0 %v1948_v31  ;;  %2045 = vmatprep.subr.bf16.mxu1 %v2044_v35  ;;  %v1968_v31 = vpack.c.bf16 %v549_v25, %v540_v24  ;;  %v2064_v35 = vpack.c.bf16 %v551_v27, %v542_v26  ;;  %v183_v1 = vld [vmem:[#allocation11 + $0x140] sm:$0xff]  ;;  %v2078_v5 = vpack.c.bf16 %v174_v62, %v165_v61  ;;  %v202_v6 = vld [vmem:[#allocation11 + $0x1d8] sm:$0xff]  ;;  %v168_v10 = vld [vmem:[#allocation11 + $0xc8] sm:$0xff] }
  0xaf   :  { %710 = vmatprep.mubr.f32.mxu0 %v2688_v51  ;;  %852 = vmatprep.mubr.f32.mxu1 %v2688_v51  ;;  %v158_v9 = vld [vmem:[#allocation11 + $0x78] sm:$0xff]  ;;  %v2080_v11 = vpack.c.bf16 %v193_v0, %v184_v63  ;;  %v177_v14 = vld [vmem:[#allocation11 + $0x110] sm:$0xff]  ;;  %v247_v44 = vld [vmem:[#allocation11 + $0x340] sm:$0xff] }
  0xb0   :  { %v2172_v18 = vpack.c.bf16 %v177_v14, %v168_v10  ;;  %v186_v19 = vld [vmem:[#allocation11 + $0x158] sm:$0xff]  ;;  %v201_v23 = vld [vmem:[#allocation11 + $0x1d0] sm:$0xff]  ;;  %v239_v62 = vld [vmem:[#allocation11 + $0x300] sm:$0xff] }
  0xb1   :  { %1951 = vmatpush1.bf16.msra.mxu0 %v1950_v41  ;;  %2047 = vmatpush1.bf16.msra.mxu1 %v2046_v42  ;;  %v1970_v41 = vpack.c.bf16 %v548_v33, %v539_v32  ;;  %v2066_v42 = vpack.c.bf16 %v550_v36, %v541_v34  ;;  %v185_v25 = vld [vmem:[#allocation11 + $0x150] sm:$0xff]  ;;  %v194_v26 = vld [vmem:[#allocation11 + $0x198] sm:$0xff]  ;;  %v220_v32 = vld [vmem:[#allocation11 + $0x268] sm:$0xff] }
  0xb2   :  { %1953 = vmatprep.subr.bf16.mxu0 %v1952_v43  ;;  %2049 = vmatprep.subr.bf16.mxu1 %v2048_v47  ;;  %v1972_v43 = vpack.c.bf16 %v567_v38, %v558_v37  ;;  %v2068_v47 = vpack.c.bf16 %v569_v40, %v560_v39  ;;  %v229_v33 = vld [vmem:[#allocation11 + $0x2b0] sm:$0xff]  ;;  %v2178_v34 = vpack.c.bf16 %v194_v26, %v185_v25  ;;  %v203_v37 = vld [vmem:[#allocation11 + $0x1e0] sm:$0xff]  ;;  %v212_v38 = vld [vmem:[#allocation11 + $0x228] sm:$0xff] }
  0xb3   :  { %v2088_v39 = vpack.c.bf16 %v229_v33, %v220_v32  ;;  %v228_v40 = vld [vmem:[#allocation11 + $0x2a8] sm:$0xff]  ;;  %v2182_v45 = vpack.c.bf16 %v212_v38, %v203_v37  ;;  %v257_v10 = vld [vmem:[#allocation11 + $0x390] sm:$0xff]  ;;  %v282_v14 = vld [vmem:[#allocation11 + $0x458] sm:$0xff] }
  0xb4   :  { %v248_v63 = vld [vmem:[#allocation11 + $0x348] sm:$0xff]  ;;  %v318_v38 = vld [vmem:[#allocation11 + $0x578] sm:$0xff] }
  0xb5   :  { %1955 = vmatpush1.bf16.msra.mxu0 %v1954_v54  ;;  %2051 = vmatpush1.bf16.msra.mxu1 %v2050_v55  ;;  %v2072_v54 = vpack.c.bf16 %v157_v50, %v148_v49  ;;  %v147_v55 = vld [vmem:[#allocation11 + $0x20] sm:$0xff]  ;;  %v221_v49 = vld [vmem:[#allocation11 + $0x270] sm:$0xff]  ;;  %v230_v50 = vld [vmem:[#allocation11 + $0x2b8] sm:$0xff] }
  0xb6   :  { %1957 = vmatprep.subr.bf16.mxu0 %v1956_v56  ;;  %2053 = vmatprep.subr.bf16.mxu1 %v2052_v60  ;;  %v156_v56 = vld [vmem:[#allocation11 + $0x68] sm:$0xff]  ;;  %v2076_v60 = vpack.c.bf16 %v175_v58, %v166_v57  ;;  %v265_v57 = vld [vmem:[#allocation11 + $0x3d0] sm:$0xff]  ;;  %v2186_v58 = vpack.c.bf16 %v230_v50, %v221_v49 }
  0xb7   :  { %v2074_v59 = vpack.c.bf16 %v156_v56, %v147_v55  ;;  %v249_v55 = vld [vmem:[#allocation11 + $0x350] sm:$0xff]  ;;  %v256_v56 = vld [vmem:[#allocation11 + $0x388] sm:$0xff] }
  0xb8   :  { %v2096_v0 = vpack.c.bf16 %v265_v57, %v256_v56  ;;  %v300_v26 = vld [vmem:[#allocation11 + $0x4e8] sm:$0xff] }
  0xb9   :  { %1959 = vmatpush1.bf16.msra.mxu0 %v1958_v2  ;;  %2055 = vmatpush1.bf16.msra.mxu1 %v2054_v3  ;;  %v192_v2 = vld [vmem:[#allocation11 + $0x188] sm:$0xff]  ;;  %v150_v3 = vld [vmem:[#allocation11 + $0x38] sm:$0xff] }
  0xba   :  { %1961 = vmatprep.subr.bf16.mxu0 %v1960_v4  ;;  %2057 = vmatprep.subr.bf16.mxu1 %v2056_v8  ;;  %v159_v4 = vld [vmem:[#allocation11 + $0x80] sm:$0xff]  ;;  %v149_v8 = vld [vmem:[#allocation11 + $0x30] sm:$0xff]  ;;  %v336_v50 = vld [vmem:[#allocation11 + $0x608] sm:$0xff] }
  0xbb   :  { %v2168_v7 = vpack.c.bf16 %v159_v4, %v150_v3  ;;  %v2170_v13 = vpack.c.bf16 %v158_v9, %v149_v8  ;;  %v267_v3 = vld [vmem:[#allocation11 + $0x3e0] sm:$0xff]  ;;  %v274_v4 = vld [vmem:[#allocation11 + $0x418] sm:$0xff]  ;;  %v273_v8 = vld [vmem:[#allocation11 + $0x410] sm:$0xff] }
  0xbd   :  { %1963 = vmatpush1.bf16.msra.mxu0 %v1962_v15  ;;  %2059 = vmatpush1.bf16.msra.mxu1 %v2058_v16  ;;  %v167_v15 = vld [vmem:[#allocation11 + $0xc0] sm:$0xff]  ;;  %v176_v16 = vld [vmem:[#allocation11 + $0x108] sm:$0xff] }
  0xbe   :  { %1965 = vmatprep.subr.bf16.mxu0 %v1964_v17  ;;  %2061 = vmatprep.subr.bf16.mxu1 %v2060_v22  ;;  %v211_v17 = vld [vmem:[#allocation11 + $0x220] sm:$0xff]  ;;  %v2174_v21 = vpack.c.bf16 %v176_v16, %v167_v15  ;;  %v2082_v22 = vpack.c.bf16 %v192_v2, %v183_v1  ;;  %v264_v1 = vld [vmem:[#allocation11 + $0x3c8] sm:$0xff]  ;;  %v258_v2 = vld [vmem:[#allocation11 + $0x398] sm:$0xff] }
  0xbf   :  { %v2084_v27 = vpack.c.bf16 %v211_v17, %v202_v6  ;;  %v2190_v6 = vpack.c.bf16 %v248_v63, %v239_v62  ;;  %v2192_v9 = vpack.c.bf16 %v267_v3, %v258_v2  ;;  %v276_v15 = vld [vmem:[#allocation11 + $0x428] sm:$0xff]  ;;  %v285_v16 = vld [vmem:[#allocation11 + $0x470] sm:$0xff]  ;;  %v354_v63 = vld [vmem:[#allocation11 + $0x698] sm:$0xff] }
  0xc0   :  { %v292_v17 = vld [vmem:[#allocation11 + $0x4a8] sm:$0xff]  ;;  %v373_v3 = vld [vmem:[#allocation11 + $0x730] sm:$0xff] }
  0xc1   :  { %1967 = vmatpush1.bf16.msra.mxu0 %v1966_v29  ;;  %2063 = vmatpush1.bf16.msra.mxu1 %v2062_v30  ;;  %v210_v29 = vld [vmem:[#allocation11 + $0x218] sm:$0xff]  ;;  %v204_v30 = vld [vmem:[#allocation11 + $0x1e8] sm:$0xff] }
  0xc2   :  { %1969 = vmatprep.subr.bf16.mxu0 %v1968_v31  ;;  %2065 = vmatprep.subr.bf16.mxu1 %v2064_v35  ;;  %v213_v31 = vld [vmem:[#allocation11 + $0x230] sm:$0xff]  ;;  %v219_v35 = vld [vmem:[#allocation11 + $0x260] sm:$0xff]  ;;  %v364_v2 = vld [vmem:[#allocation11 + $0x6e8] sm:$0xff] }
  0xc3   :  { %v2180_v36 = vpack.c.bf16 %v213_v31, %v204_v30  ;;  %v2090_v46 = vpack.c.bf16 %v228_v40, %v219_v35  ;;  %v310_v30 = vld [vmem:[#allocation11 + $0x538] sm:$0xff]  ;;  %v319_v31 = vld [vmem:[#allocation11 + $0x580] sm:$0xff]  ;;  %v293_v35 = vld [vmem:[#allocation11 + $0x4b0] sm:$0xff] }
  0xc4   :  { %v2108_v37 = vpack.c.bf16 %v319_v31, %v310_v30  ;;  %v321_v40 = vld [vmem:[#allocation11 + $0x590] sm:$0xff] }
  0xc5   :  { %1971 = vmatpush1.bf16.msra.mxu0 %v1970_v41  ;;  %2067 = vmatpush1.bf16.msra.mxu1 %v2066_v42  ;;  %v222_v41 = vld [vmem:[#allocation11 + $0x278] sm:$0xff]  ;;  %v231_v42 = vld [vmem:[#allocation11 + $0x2c0] sm:$0xff] }
  0xc6   :  { %1973 = vmatprep.subr.bf16.mxu0 %v1972_v43  ;;  %2069 = vmatprep.subr.bf16.mxu1 %v2068_v47  ;;  %v238_v43 = vld [vmem:[#allocation11 + $0x2f8] sm:$0xff]  ;;  %v237_v47 = vld [vmem:[#allocation11 + $0x2f0] sm:$0xff]  ;;  %v2184_v48 = vpack.c.bf16 %v231_v42, %v222_v41  ;;  %v328_v41 = vld [vmem:[#allocation11 + $0x5c8] sm:$0xff] }
  0xc7   :  { %v337_v42 = vld [vmem:[#allocation11 + $0x610] sm:$0xff] }
  0xc8   :  { %v2112_v49 = vpack.c.bf16 %v337_v42, %v328_v41 }
  0xc9   :  { %1975 = vmatpush1.bf16.msra.mxu0 %v1974_v52  ;;  %2071 = vmatpush1.bf16.msra.mxu1 %v2070_v53  ;;  %v2092_v52 = vpack.c.bf16 %v247_v44, %v238_v43  ;;  %v246_v53 = vld [vmem:[#allocation11 + $0x338] sm:$0xff] }
  0xca   :  { %2073 = vmatprep.subr.bf16.mxu0 %v2072_v54  ;;  %2169 = vmatprep.subr.bf16.mxu1 %v2168_v7  ;;  %v240_v54 = vld [vmem:[#allocation11 + $0x308] sm:$0xff] }
  0xcb   :  { %v2188_v61 = vpack.c.bf16 %v249_v55, %v240_v54  ;;  %v346_v54 = vld [vmem:[#allocation11 + $0x658] sm:$0xff]  ;;  %v355_v55 = vld [vmem:[#allocation11 + $0x6a0] sm:$0xff] }
  0xcc   :  { %711 = vmatmul.mubr.f32.vlgmr.msra.gmra.mrb[0].mxu0 %v2687_v12  ;;  %853 = vmatmul.mubr.f32.vlgmr.msra.gmra.mrb[0].mxu1 %v2687_v12  ;;  %v195_v12 = vld [vmem:[#allocation11 + $0x1a0] sm:$0xff]  ;;  %v2116_v62 = vpack.c.bf16 %v355_v55, %v346_v54 }
  0xcd   :  { %2075 = vmatpush1.bf16.msra.mxu0 %v2074_v59  ;;  %923 = vmatprep.mubr.f32.mxu0 %v2835_v20  ;;  %v2176_v24 = vpack.c.bf16 %v195_v12, %v186_v19  ;;  %v2094_v59 = vpack.c.bf16 %v246_v53, %v237_v47  ;;  %v2102_v12 = vpack.c.bf16 %v282_v14, %v273_v8  ;;  %v311_v47 = vld [vmem:[#allocation11 + $0x540] sm:$0xff] }
  0xce   :  { %2077 = vmatprep.subr.bf16.mxu0 %v2076_v60  ;;  %1065 = vmatprep.mubr.f32.mxu1 %v2835_v20  ;;  %v2086_v20 = vpack.c.bf16 %v210_v29, %v201_v23  ;;  %v255_v60 = vld [vmem:[#allocation11 + $0x380] sm:$0xff] }
  0xcf   :  { %2171 = vmatpush1.bf16.msra.mxu1 %v2170_v13  ;;  %v2098_v7 = vpack.c.bf16 %v264_v1, %v255_v60  ;;  %v275_v23 = vld [vmem:[#allocation11 + $0x420] sm:$0xff]  ;;  %v329_v60 = vld [vmem:[#allocation11 + $0x5d0] sm:$0xff] }
  0xd0   :  { %2173 = vmatprep.subr.bf16.mxu1 %v2172_v18  ;;  %v301_v18 = vld [vmem:[#allocation11 + $0x4f0] sm:$0xff]  ;;  %v303_v29 = vld [vmem:[#allocation11 + $0x500] sm:$0xff] }
  0xd1   :  { %2079 = vmatpush1.bf16.msra.mxu0 %v2078_v5  ;;  %v283_v5 = vld [vmem:[#allocation11 + $0x460] sm:$0xff]  ;;  %v2104_v25 = vpack.c.bf16 %v301_v18, %v292_v17  ;;  %v357_v1 = vld [vmem:[#allocation11 + $0x6b0] sm:$0xff] }
  0xd2   :  { %2081 = vmatprep.subr.bf16.mxu0 %v2080_v11  ;;  %v266_v11 = vld [vmem:[#allocation11 + $0x3d8] sm:$0xff]  ;;  %v2100_v13 = vpack.c.bf16 %v283_v5, %v274_v4  ;;  %v339_v53 = vld [vmem:[#allocation11 + $0x620] sm:$0xff] }
  0xd3   :  { %2175 = vmatpush1.bf16.msra.mxu1 %v2174_v21  ;;  %v2194_v19 = vpack.c.bf16 %v266_v11, %v257_v10  ;;  %v291_v21 = vld [vmem:[#allocation11 + $0x4a0] sm:$0xff]  ;;  %v2120_v10 = vpack.c.bf16 %v373_v3, %v364_v2  ;;  %v372_v11 = vld [vmem:[#allocation11 + $0x728] sm:$0xff]  ;;  %v481_v3 = vld [vmem:[#allocation11 + $0xa90] sm:$0xff] }
  0xd4   :  { %2177 = vmatprep.subr.bf16.mxu1 %v2176_v24  ;;  %v284_v24 = vld [vmem:[#allocation11 + $0x468] sm:$0xff]  ;;  %v2106_v33 = vpack.c.bf16 %v300_v26, %v291_v21  ;;  %v347_v8 = vld [vmem:[#allocation11 + $0x660] sm:$0xff]  ;;  %v365_v21 = vld [vmem:[#allocation11 + $0x6f0] sm:$0xff] }
  0xd5   :  { %2083 = vmatpush1.bf16.msra.mxu0 %v2082_v22  ;;  %v2196_v22 = vpack.c.bf16 %v285_v16, %v276_v15  ;;  %v2198_v32 = vpack.c.bf16 %v284_v24, %v275_v23  ;;  %v375_v14 = vld [vmem:[#allocation11 + $0x740] sm:$0xff]  ;;  %v382_v15 = vld [vmem:[#allocation11 + $0x778] sm:$0xff]  ;;  %v393_v26 = vld [vmem:[#allocation11 + $0x7d0] sm:$0xff] }
  0xd6   :  { %2085 = vmatprep.subr.bf16.mxu0 %v2084_v27  ;;  %v294_v27 = vld [vmem:[#allocation11 + $0x4b8] sm:$0xff]  ;;  %v391_v16 = vld [vmem:[#allocation11 + $0x7c0] sm:$0xff]  ;;  %v472_v2 = vld [vmem:[#allocation11 + $0xa48] sm:$0xff] }
  0xd7   :  { %2179 = vmatpush1.bf16.msra.mxu1 %v2178_v34  ;;  %v309_v34 = vld [vmem:[#allocation11 + $0x530] sm:$0xff]  ;;  %v2124_v23 = vpack.c.bf16 %v391_v16, %v382_v15  ;;  %v390_v24 = vld [vmem:[#allocation11 + $0x7b8] sm:$0xff]  ;;  %v508_v15 = vld [vmem:[#allocation11 + $0xb68] sm:$0xff] }
  0xd8   :  { %2181 = vmatprep.subr.bf16.mxu1 %v2180_v36  ;;  %v302_v36 = vld [vmem:[#allocation11 + $0x4f8] sm:$0xff]  ;;  %v2110_v44 = vpack.c.bf16 %v318_v38, %v309_v34  ;;  %v383_v34 = vld [vmem:[#allocation11 + $0x780] sm:$0xff]  ;;  %v517_v16 = vld [vmem:[#allocation11 + $0xbb0] sm:$0xff] }
  0xd9   :  { %2087 = vmatpush1.bf16.msra.mxu0 %v2086_v20  ;;  %v2200_v20 = vpack.c.bf16 %v303_v29, %v294_v27  ;;  %v2202_v43 = vpack.c.bf16 %v302_v36, %v293_v35  ;;  %v400_v27 = vld [vmem:[#allocation11 + $0x808] sm:$0xff]  ;;  %v409_v29 = vld [vmem:[#allocation11 + $0x850] sm:$0xff]  ;;  %v411_v38 = vld [vmem:[#allocation11 + $0x860] sm:$0xff] }
  0xda   :  { %2089 = vmatprep.subr.bf16.mxu0 %v2088_v39  ;;  %v312_v39 = vld [vmem:[#allocation11 + $0x548] sm:$0xff]  ;;  %v2128_v35 = vpack.c.bf16 %v409_v29, %v400_v27  ;;  %v553_v29 = vld [vmem:[#allocation11 + $0xcd0] sm:$0xff] }
  0xdb   :  { %2183 = vmatpush1.bf16.msra.mxu1 %v2182_v45  ;;  %v327_v45 = vld [vmem:[#allocation11 + $0x5c0] sm:$0xff]  ;;  %v408_v36 = vld [vmem:[#allocation11 + $0x848] sm:$0xff] }
  0xdc   :  { %2185 = vmatprep.subr.bf16.mxu1 %v2184_v48  ;;  %v320_v48 = vld [vmem:[#allocation11 + $0x588] sm:$0xff]  ;;  %v2114_v57 = vpack.c.bf16 %v336_v50, %v327_v45  ;;  %v401_v45 = vld [vmem:[#allocation11 + $0x810] sm:$0xff] }
  0xdd   :  { %2091 = vmatpush1.bf16.msra.mxu0 %v2090_v46  ;;  %v2204_v46 = vpack.c.bf16 %v321_v40, %v312_v39  ;;  %v2206_v56 = vpack.c.bf16 %v320_v48, %v311_v47  ;;  %v418_v39 = vld [vmem:[#allocation11 + $0x898] sm:$0xff]  ;;  %v427_v40 = vld [vmem:[#allocation11 + $0x8e0] sm:$0xff]  ;;  %v429_v50 = vld [vmem:[#allocation11 + $0x8f0] sm:$0xff] }
  0xde   :  { %2093 = vmatprep.subr.bf16.mxu0 %v2092_v52  ;;  %v330_v52 = vld [vmem:[#allocation11 + $0x5d8] sm:$0xff]  ;;  %v2132_v47 = vpack.c.bf16 %v427_v40, %v418_v39  ;;  %v544_v27 = vld [vmem:[#allocation11 + $0xc88] sm:$0xff]  ;;  %v447_v39 = vld [vmem:[#allocation11 + $0x980] sm:$0xff] }
  0xdf   :  { %2187 = vmatpush1.bf16.msra.mxu1 %v2186_v58  ;;  %v345_v58 = vld [vmem:[#allocation11 + $0x650] sm:$0xff]  ;;  %v426_v48 = vld [vmem:[#allocation11 + $0x8d8] sm:$0xff] }
  0xe0   :  { %2189 = vmatprep.subr.bf16.mxu1 %v2188_v61  ;;  %v338_v61 = vld [vmem:[#allocation11 + $0x618] sm:$0xff]  ;;  %v2118_v5 = vpack.c.bf16 %v354_v63, %v345_v58  ;;  %v435_v58 = vld [vmem:[#allocation11 + $0x920] sm:$0xff] }
  0xe1   :  { %2095 = vmatpush1.bf16.msra.mxu0 %v2094_v59  ;;  %v2208_v59 = vpack.c.bf16 %v339_v53, %v330_v52  ;;  %v2210_v4 = vpack.c.bf16 %v338_v61, %v329_v60  ;;  %v436_v52 = vld [vmem:[#allocation11 + $0x928] sm:$0xff]  ;;  %v445_v53 = vld [vmem:[#allocation11 + $0x970] sm:$0xff]  ;;  %v454_v60 = vld [vmem:[#allocation11 + $0x9b8] sm:$0xff] }
  0xe2   :  { %2097 = vmatprep.subr.bf16.mxu0 %v2096_v0  ;;  %v348_v0 = vld [vmem:[#allocation11 + $0x668] sm:$0xff]  ;;  %v463_v61 = vld [vmem:[#allocation11 + $0xa00] sm:$0xff] }
  0xe3   :  { %2191 = vmatpush1.bf16.msra.mxu1 %v2190_v6  ;;  %v363_v6 = vld [vmem:[#allocation11 + $0x6e0] sm:$0xff]  ;;  %v2140_v63 = vpack.c.bf16 %v463_v61, %v454_v60  ;;  %v2862_v61 = vld [vmem:[#allocation2 + $0x10] sm:$0xff] }
  0xe4   :  { %2193 = vmatprep.subr.bf16.mxu1 %v2192_v9  ;;  %v356_v9 = vld [vmem:[#allocation11 + $0x6a8] sm:$0xff]  ;;  %v2122_v18 = vpack.c.bf16 %v372_v11, %v363_v6  ;;  %v471_v6 = vld [vmem:[#allocation11 + $0xa40] sm:$0xff] }
  0xe5   :  { %2099 = vmatpush1.bf16.msra.mxu0 %v2098_v7  ;;  %v2212_v7 = vpack.c.bf16 %v357_v1, %v348_v0  ;;  %v2214_v17 = vpack.c.bf16 %v356_v9, %v347_v8  ;;  %v453_v0 = vld [vmem:[#allocation11 + $0x9b0] sm:$0xff]  ;;  %v462_v1 = vld [vmem:[#allocation11 + $0x9f8] sm:$0xff]  ;;  %v499_v9 = vld [vmem:[#allocation11 + $0xb20] sm:$0xff] }
  0xe6   :  { %2101 = vmatprep.subr.bf16.mxu0 %v2100_v13  ;;  %v366_v13 = vld [vmem:[#allocation11 + $0x6f8] sm:$0xff] }
  0xe7   :  { %2195 = vmatpush1.bf16.msra.mxu1 %v2194_v19  ;;  %v381_v19 = vld [vmem:[#allocation11 + $0x770] sm:$0xff]  ;;  %v490_v8 = vld [vmem:[#allocation11 + $0xad8] sm:$0xff] }
  0xe8   :  { %2197 = vmatprep.subr.bf16.mxu1 %v2196_v22  ;;  %v374_v22 = vld [vmem:[#allocation11 + $0x738] sm:$0xff]  ;;  %v2126_v31 = vpack.c.bf16 %v390_v24, %v381_v19  ;;  %v2148_v11 = vpack.c.bf16 %v499_v9, %v490_v8  ;;  %v507_v19 = vld [vmem:[#allocation11 + $0xb60] sm:$0xff]  ;;  %v509_v8 = vld [vmem:[#allocation11 + $0xb70] sm:$0xff] }
  0xe9   :  { %2103 = vmatpush1.bf16.msra.mxu0 %v2102_v12  ;;  %v2216_v12 = vpack.c.bf16 %v375_v14, %v366_v13  ;;  %v2218_v30 = vpack.c.bf16 %v374_v22, %v365_v21  ;;  %v489_v13 = vld [vmem:[#allocation11 + $0xad0] sm:$0xff]  ;;  %v498_v14 = vld [vmem:[#allocation11 + $0xb18] sm:$0xff]  ;;  %v535_v22 = vld [vmem:[#allocation11 + $0xc40] sm:$0xff] }
  0xea   :  { %2105 = vmatprep.subr.bf16.mxu0 %v2104_v25  ;;  %v384_v25 = vld [vmem:[#allocation11 + $0x788] sm:$0xff]  ;;  %v526_v21 = vld [vmem:[#allocation11 + $0xbf8] sm:$0xff] }
  0xeb   :  { %2199 = vmatpush1.bf16.msra.mxu1 %v2198_v32  ;;  %v399_v32 = vld [vmem:[#allocation11 + $0x800] sm:$0xff]  ;;  %v2156_v24 = vpack.c.bf16 %v535_v22, %v526_v21  ;;  %v518_v9 = vld [vmem:[#allocation11 + $0xbb8] sm:$0xff]  ;;  %v545_v21 = vld [vmem:[#allocation11 + $0xc90] sm:$0xff] }
  0xec   :  { %2201 = vmatprep.subr.bf16.mxu1 %v2200_v20  ;;  %v392_v20 = vld [vmem:[#allocation11 + $0x7c8] sm:$0xff]  ;;  %v2130_v42 = vpack.c.bf16 %v408_v36, %v399_v32  ;;  %v562_v36 = vld [vmem:[#allocation11 + $0xd18] sm:$0xff] }
  0xed   :  { %2107 = vmatpush1.bf16.msra.mxu0 %v2106_v33  ;;  %v2220_v33 = vpack.c.bf16 %v393_v26, %v384_v25  ;;  %v2222_v41 = vpack.c.bf16 %v392_v20, %v383_v34  ;;  %v525_v25 = vld [vmem:[#allocation11 + $0xbf0] sm:$0xff]  ;;  %v534_v26 = vld [vmem:[#allocation11 + $0xc38] sm:$0xff]  ;;  %v428_v32 = vld [vmem:[#allocation11 + $0x8e8] sm:$0xff] }
  0xee   :  { %2109 = vmatprep.subr.bf16.mxu0 %v2108_v37  ;;  %v402_v37 = vld [vmem:[#allocation11 + $0x818] sm:$0xff]  ;;  %v543_v34 = vld [vmem:[#allocation11 + $0xc80] sm:$0xff]  ;;  %v552_v20 = vld [vmem:[#allocation11 + $0xcc8] sm:$0xff] }
  0xef   :  { %2203 = vmatpush1.bf16.msra.mxu1 %v2202_v43  ;;  %v417_v43 = vld [vmem:[#allocation11 + $0x890] sm:$0xff]  ;;  %v2162_v40 = vpack.c.bf16 %v552_v20, %v543_v34  ;;  %v554_v22 = vld [vmem:[#allocation11 + $0xcd8] sm:$0xff] }
  0xf0   :  { %2205 = vmatprep.subr.bf16.mxu1 %v2204_v46  ;;  %v410_v46 = vld [vmem:[#allocation11 + $0x858] sm:$0xff]  ;;  %v2134_v55 = vpack.c.bf16 %v426_v48, %v417_v43  ;;  %v456_v48 = vld [vmem:[#allocation11 + $0x9c8] sm:$0xff] }
  0xf1   :  { %2111 = vmatpush1.bf16.msra.mxu0 %v2110_v44  ;;  %v2224_v44 = vpack.c.bf16 %v411_v38, %v402_v37  ;;  %v2226_v54 = vpack.c.bf16 %v410_v46, %v401_v45  ;;  %v571_v37 = vld [vmem:[#allocation11 + $0xd60] sm:$0xff]  ;;  %v438_v38 = vld [vmem:[#allocation11 + $0x938] sm:$0xff]  ;;  %v561_v45 = vld [vmem:[#allocation11 + $0xd10] sm:$0xff] }
  0xf2   :  { %2113 = vmatprep.subr.bf16.mxu0 %v2112_v49  ;;  %v420_v49 = vld [vmem:[#allocation11 + $0x8a8] sm:$0xff]  ;;  %v446_v43 = vld [vmem:[#allocation11 + $0x978] sm:$0xff] }
  0xf3   :  { %2207 = vmatpush1.bf16.msra.mxu1 %v2206_v56  ;;  %v2228_v56 = vpack.c.bf16 %v429_v50, %v420_v49  ;;  %v570_v46 = vld [vmem:[#allocation11 + $0xd58] sm:$0xff]  ;;  %v465_v49 = vld [vmem:[#allocation11 + $0xa10] sm:$0xff] }
  0xf4   :  { %2209 = vmatprep.subr.bf16.mxu1 %v2208_v59  ;;  %v444_v59 = vld [vmem:[#allocation11 + $0x968] sm:$0xff]  ;;  %v2166_v50 = vpack.c.bf16 %v570_v46, %v561_v45  ;;  %v187_v46 = vld [vmem:[#allocation11 + $0x160] sm:$0xff] }
  0xf5   :  { %2115 = vmatpush1.bf16.msra.mxu0 %v2114_v57  ;;  %v2136_v57 = vpack.c.bf16 %v445_v53, %v436_v52  ;;  %v2236_v52 = vpack.c.bf16 %v465_v49, %v456_v48  ;;  %v455_v53 = vld [vmem:[#allocation11 + $0x9c0] sm:$0xff]  ;;  %v448_v48 = vld [vmem:[#allocation11 + $0x988] sm:$0xff]  ;;  %v349_v49 = vld [vmem:[#allocation11 + $0x670] sm:$0xff] }
  0xf6   :  { %2117 = vmatprep.subr.bf16.mxu0 %v2116_v62  ;;  %v2138_v62 = vpack.c.bf16 %v444_v59, %v435_v58  ;;  %v473_v59 = vld [vmem:[#allocation11 + $0xa50] sm:$0xff] }
  0xf7   :  { %2211 = vmatpush1.bf16.msra.mxu1 %v2210_v4  ;;  %v2142_v4 = vpack.c.bf16 %v462_v1, %v453_v0  ;;  %v491_v1 = vld [vmem:[#allocation11 + $0xae0] sm:$0xff] }
  0xf8   :  { %2213 = vmatprep.subr.bf16.mxu1 %v2212_v7  ;;  %v480_v7 = vld [vmem:[#allocation11 + $0xa88] sm:$0xff] }
  0xf9   :  { %2119 = vmatpush1.bf16.msra.mxu0 %v2118_v5  ;;  %v2144_v5 = vpack.c.bf16 %v481_v3, %v472_v2  ;;  %v500_v2 = vld [vmem:[#allocation11 + $0xb28] sm:$0xff] }
  0xfa   :  { %2121 = vmatprep.subr.bf16.mxu0 %v2120_v10  ;;  %v2146_v10 = vpack.c.bf16 %v480_v7, %v471_v6  ;;  %v2865_v3 = vld [vmem:[#allocation2 + $0x8] sm:$0xff]  ;;  %v519_v6 = vld [vmem:[#allocation11 + $0xbc0] sm:$0xff] }
  0xfb   :  { %2215 = vmatpush1.bf16.msra.mxu1 %v2214_v17  ;;  %v2150_v17 = vpack.c.bf16 %v498_v14, %v489_v13  ;;  %v537_v13 = vld [vmem:[#allocation11 + $0xc50] sm:$0xff]  ;;  %v527_v14 = vld [vmem:[#allocation11 + $0xc00] sm:$0xff] }
  0xfc   :  { %2217 = vmatprep.subr.bf16.mxu1 %v2216_v12  ;;  %v516_v12 = vld [vmem:[#allocation11 + $0xba8] sm:$0xff] }
  0xfd   :  { %2123 = vmatpush1.bf16.msra.mxu0 %v2122_v18  ;;  %v2152_v18 = vpack.c.bf16 %v517_v16, %v508_v15  ;;  %v536_v16 = vld [vmem:[#allocation11 + $0xc48] sm:$0xff] }
  0xfe   :  { %2125 = vmatprep.subr.bf16.mxu0 %v2124_v23  ;;  %v2154_v23 = vpack.c.bf16 %v516_v12, %v507_v19  ;;  %v2254_v19 = vpack.c.bf16 %v536_v16, %v527_v14  ;;  %v250_v14 = vld [vmem:[#allocation11 + $0x358] sm:$0xff]  ;;  %v403_v16 = vld [vmem:[#allocation11 + $0x820] sm:$0xff] }
  0xff   :  { %2219 = vmatpush1.bf16.msra.mxu1 %v2218_v30  ;;  %v2158_v30 = vpack.c.bf16 %v534_v26, %v525_v25  ;;  %v295_v25 = vld [vmem:[#allocation11 + $0x4c0] sm:$0xff]  ;;  %v304_v26 = vld [vmem:[#allocation11 + $0x508] sm:$0xff] }
 0x100   :  { %2221 = vmatprep.subr.bf16.mxu1 %v2220_v33  ;;  %v2160_v33 = vpack.c.bf16 %v553_v29, %v544_v27  ;;  %v151_v27 = vld [vmem:[#allocation11 + $0x40] sm:$0xff]  ;;  %v2258_v29 = vpack.c.bf16 %v554_v22, %v545_v21  ;;  %v268_v22 = vld [vmem:[#allocation11 + $0x3e8] sm:$0xff] }
 0x101   :  { %2127 = vmatpush1.bf16.msra.mxu0 %v2126_v31  ;;  %v419_v31 = vld [vmem:[#allocation11 + $0x8a0] sm:$0xff] }
 0x102   :  { %2129 = vmatprep.subr.bf16.mxu0 %v2128_v35  ;;  %v2230_v35 = vpack.c.bf16 %v428_v32, %v419_v31  ;;  %v572_v31 = vld [vmem:[#allocation11 + $0xd68] sm:$0xff]  ;;  %v2264_v32 = vpack.c.bf16 %v304_v26, %v295_v25  ;;  %v259_v21 = vld [vmem:[#allocation11 + $0x3a0] sm:$0xff]  ;;  %v430_v25 = vld [vmem:[#allocation11 + $0x8f8] sm:$0xff] }
 0x103   :  { %2223 = vmatpush1.bf16.msra.mxu1 %v2222_v41  ;;  %v2232_v41 = vpack.c.bf16 %v447_v39, %v438_v38  ;;  %v178_v39 = vld [vmem:[#allocation11 + $0x118] sm:$0xff]  ;;  %v2290_v26 = vpack.c.bf16 %v268_v22, %v259_v21  ;;  %v1353_v22 = vld [vmem:[#allocation12 + $0x170] sm:$0xff] }
 0x104   :  { %2225 = vmatprep.subr.bf16.mxu1 %v2224_v44  ;;  %v2164_v44 = vpack.c.bf16 %v571_v37, %v562_v36  ;;  %v322_v36 = vld [vmem:[#allocation11 + $0x598] sm:$0xff]  ;;  %v169_v37 = vld [vmem:[#allocation11 + $0xd0] sm:$0xff] }
 0x105   :  { %2131 = vmatpush1.bf16.msra.mxu0 %v2130_v42  ;;  %v437_v42 = vld [vmem:[#allocation11 + $0x930] sm:$0xff]  ;;  %v1350_v21 = vld [vmem:[#allocation12 + $0x158] sm:$0xff] }
 0x106   :  { %2133 = vmatprep.subr.bf16.mxu0 %v2132_v47  ;;  %v2234_v47 = vpack.c.bf16 %v446_v43, %v437_v42  ;;  %v340_v42 = vld [vmem:[#allocation11 + $0x628] sm:$0xff] }
 0x107   :  { %2227 = vmatpush1.bf16.msra.mxu1 %v2226_v54  ;;  %v464_v54 = vld [vmem:[#allocation11 + $0xa08] sm:$0xff] }
 0x108   :  { %2229 = vmatprep.subr.bf16.mxu1 %v2228_v56  ;;  %v474_v56 = vld [vmem:[#allocation11 + $0xa58] sm:$0xff] }
 0x109   :  { %2135 = vmatpush1.bf16.msra.mxu0 %v2134_v55  ;;  %v2238_v55 = vpack.c.bf16 %v464_v54, %v455_v53  ;;  %v457_v54 = vld [vmem:[#allocation11 + $0x9d0] sm:$0xff] }
 0x10a   :  { %2137 = vmatprep.subr.bf16.mxu0 %v2136_v57  ;;  %v483_v57 = vld [vmem:[#allocation11 + $0xaa0] sm:$0xff] }
 0x10b   :  { %2231 = vmatpush1.bf16.msra.mxu1 %v2230_v35  ;;  %v2240_v58 = vpack.c.bf16 %v483_v57, %v474_v56  ;;  %v313_v35 = vld [vmem:[#allocation11 + $0x550] sm:$0xff]  ;;  %v214_v57 = vld [vmem:[#allocation11 + $0x238] sm:$0xff] }
 0x10c   :  { %924 = vmatmul.mubr.f32.vlgmr.msra.gmra.mrb[2].mxu0 %v2848_v28  ;;  %2233 = vmatprep.subr.bf16.mxu1 %v2232_v41  ;;  %v2268_v38 = vpack.c.bf16 %v322_v36, %v313_v35  ;;  %v331_v41 = vld [vmem:[#allocation11 + $0x5e0] sm:$0xff]  ;;  %v205_v56 = vld [vmem:[#allocation11 + $0x1f0] sm:$0xff]  ;;  %v556_v36 = vld [vmem:[#allocation11 + $0xce8] sm:$0xff] }
 0x10d   :  { %2139 = vmatpush1.bf16.msra.mxu0 %v2138_v62  ;;  %994 = vmatprep.mubr.f32.mxu0 %v2688_v51  ;;  %v492_v62 = vld [vmem:[#allocation11 + $0xae8] sm:$0xff]  ;;  %v2272_v45 = vpack.c.bf16 %v340_v42, %v331_v41  ;;  %v547_v35 = vld [vmem:[#allocation11 + $0xca0] sm:$0xff] }
 0x10e   :  { %2141 = vmatprep.subr.bf16.mxu0 %v2140_v63  ;;  %1066 = vmatmul.mubr.f32.vlgmr.msra.gmra.mrb[2].mxu1 %v2848_v28  ;;  %v482_v28 = vld [vmem:[#allocation11 + $0xa98] sm:$0xff]  ;;  %v501_v63 = vld [vmem:[#allocation11 + $0xb30] sm:$0xff]  ;;  %v1308_v41 = vld [vmem:[#allocation12 + $0x8] sm:$0xff] }
 0x10f   :  { %2235 = vmatpush1.bf16.msra.mxu1 %v2234_v47  ;;  %1136 = vmatprep.mubr.f32.mxu1 %v2688_v51  ;;  %v2242_v60 = vpack.c.bf16 %v482_v28, %v473_v59  ;;  %v2244_v0 = vpack.c.bf16 %v501_v63, %v492_v62  ;;  %v196_v47 = vld [vmem:[#allocation11 + $0x1a8] sm:$0xff]  ;;  %v466_v59 = vld [vmem:[#allocation11 + $0xa18] sm:$0xff]  ;;  %v367_v28 = vld [vmem:[#allocation11 + $0x700] sm:$0xff]  ;;  %v2278_v62 = vpack.c.bf16 %v214_v57, %v205_v56 }
 0x110   :  { %2237 = vmatprep.subr.bf16.mxu1 %v2236_v52  ;;  %v2274_v52 = vpack.c.bf16 %v196_v47, %v187_v46  ;;  %v2300_v63 = vpack.c.bf16 %v466_v59, %v457_v54  ;;  %v1311_v42 = vld [vmem:[#allocation12 + $0x20] sm:$0xff]  ;;  %v1310_v46 = vld [vmem:[#allocation12 + $0x18] sm:$0xff]  ;;  %v1320_v54 = vld [vmem:[#allocation12 + $0x68] sm:$0xff] }
 0x111   :  { %2143 = vmatpush1.bf16.msra.mxu0 %v2142_v4  ;;  %v2246_v4 = vpack.c.bf16 %v500_v2, %v491_v1  ;;  %v223_v2 = vld [vmem:[#allocation11 + $0x280] sm:$0xff]  ;;  %v1314_v47 = vld [vmem:[#allocation12 + $0x38] sm:$0xff] }
 0x112   :  { %2145 = vmatprep.subr.bf16.mxu0 %v2144_v5  ;;  %v510_v5 = vld [vmem:[#allocation11 + $0xb78] sm:$0xff] }
 0x113   :  { %2239 = vmatpush1.bf16.msra.mxu1 %v2238_v55  ;;  %v2248_v7 = vpack.c.bf16 %v519_v6, %v510_v5  ;;  %v484_v5 = vld [vmem:[#allocation11 + $0xaa8] sm:$0xff]  ;;  %v385_v6 = vld [vmem:[#allocation11 + $0x790] sm:$0xff]  ;;  %v1322_v59 = vld [vmem:[#allocation12 + $0x78] sm:$0xff] }
 0x114   :  { %2241 = vmatprep.subr.bf16.mxu1 %v2240_v58  ;;  %v2689_v58 = vmov 0.0|0.0  }
 0x115   :  { %2147 = vmatpush1.bf16.msra.mxu0 %v2146_v10  ;;  %v2250_v10 = vpack.c.bf16 %v518_v9, %v509_v8 }
 0x116   :  { %2149 = vmatprep.subr.bf16.mxu0 %v2148_v11  ;;  %v528_v11 = vld [vmem:[#allocation11 + $0xc08] sm:$0xff] }
 0x117   :  { %2243 = vmatpush1.bf16.msra.mxu1 %v2242_v60  ;;  %v2252_v15 = vpack.c.bf16 %v537_v13, %v528_v11  ;;  %v376_v60 = vld [vmem:[#allocation11 + $0x748] sm:$0xff]  ;;  %v241_v13 = vld [vmem:[#allocation11 + $0x310] sm:$0xff] }
 0x118   :  { %2245 = vmatprep.subr.bf16.mxu1 %v2244_v0  ;;  %v475_v0 = vld [vmem:[#allocation11 + $0xa60] sm:$0xff]  ;;  %v2280_v1 = vpack.c.bf16 %v376_v60, %v367_v28  ;;  %v1326_v28 = vld [vmem:[#allocation12 + $0x98] sm:$0xff]  ;;  %v1329_v60 = vld [vmem:[#allocation12 + $0xb0] sm:$0xff] }
 0x119   :  { %2151 = vmatpush1.bf16.msra.mxu0 %v2150_v17  ;;  %v546_v17 = vld [vmem:[#allocation11 + $0xc98] sm:$0xff]  ;;  %v2303_v9 = vpack.c.bf16 %v484_v5, %v475_v0  ;;  %v1325_v0 = vld [vmem:[#allocation12 + $0x90] sm:$0xff] }
 0x11a   :  { %2153 = vmatprep.subr.bf16.mxu0 %v2152_v18  ;;  %v555_v18 = vld [vmem:[#allocation11 + $0xce0] sm:$0xff] }
 0x11b   :  { %2247 = vmatpush1.bf16.msra.mxu1 %v2246_v4  ;;  %v2256_v12 = vpack.c.bf16 %v555_v18, %v546_v17  ;;  %v232_v4 = vld [vmem:[#allocation11 + $0x2c8] sm:$0xff]  ;;  %v2286_v18 = vpack.c.bf16 %v250_v14, %v241_v13  ;;  %v1337_v14 = vld [vmem:[#allocation12 + $0xf0] sm:$0xff] }
 0x11c   :  { %2249 = vmatprep.subr.bf16.mxu1 %v2248_v7  ;;  %v394_v7 = vld [vmem:[#allocation11 + $0x7d8] sm:$0xff]  ;;  %v2282_v8 = vpack.c.bf16 %v232_v4, %v223_v2  ;;  %v412_v17 = vld [vmem:[#allocation11 + $0x868] sm:$0xff]  ;;  %v1335_v4 = vld [vmem:[#allocation12 + $0xe0] sm:$0xff] }
 0x11d   :  { %2155 = vmatpush1.bf16.msra.mxu0 %v2154_v23  ;;  %v564_v23 = vld [vmem:[#allocation11 + $0xd28] sm:$0xff]  ;;  %v2284_v11 = vpack.c.bf16 %v394_v7, %v385_v6  ;;  %v1331_v7 = vld [vmem:[#allocation12 + $0xc0] sm:$0xff] }
 0x11e   :  { %2157 = vmatprep.subr.bf16.mxu0 %v2156_v24  ;;  %v573_v24 = vld [vmem:[#allocation11 + $0xd70] sm:$0xff]  ;;  %v1332_v2 = vld [vmem:[#allocation12 + $0xc8] sm:$0xff] }
 0x11f   :  { %2251 = vmatpush1.bf16.msra.mxu1 %v2250_v10  ;;  %v2260_v34 = vpack.c.bf16 %v573_v24, %v564_v23  ;;  %v493_v10 = vld [vmem:[#allocation11 + $0xaf0] sm:$0xff]  ;;  %v520_v23 = vld [vmem:[#allocation11 + $0xbc8] sm:$0xff]  ;;  %v2336_v6 = vpack.c.bf16 %v1335_v4, %v1332_v2  ;;  %v1375_v4 = vld [vmem:[#allocation12 + $0x220] sm:$0xff] }
 0x120   :  { %2253 = vmatprep.subr.bf16.mxu1 %v2252_v15  ;;  %v502_v15 = vld [vmem:[#allocation11 + $0xb38] sm:$0xff]  ;;  %v421_v24 = vld [vmem:[#allocation11 + $0x8b0] sm:$0xff] }
 0x121   :  { %2159 = vmatpush1.bf16.msra.mxu0 %v2158_v30  ;;  %v563_v30 = vld [vmem:[#allocation11 + $0xd20] sm:$0xff]  ;;  %v1377_v2 = vld [vmem:[#allocation12 + $0x230] sm:$0xff] }
 0x122   :  { %2161 = vmatprep.subr.bf16.mxu0 %v2160_v33  ;;  %v160_v33 = vld [vmem:[#allocation11 + $0x88] sm:$0xff]  ;;  %v2262_v43 = vpack.c.bf16 %v572_v31, %v563_v30  ;;  %v277_v30 = vld [vmem:[#allocation11 + $0x430] sm:$0xff]  ;;  %v286_v31 = vld [vmem:[#allocation11 + $0x478] sm:$0xff] }
 0x123   :  { %2255 = vmatpush1.bf16.msra.mxu1 %v2254_v19  ;;  %v2266_v20 = vpack.c.bf16 %v160_v33, %v151_v27  ;;  %v2306_v19 = vpack.c.bf16 %v502_v15, %v493_v10  ;;  %v538_v33 = vld [vmem:[#allocation11 + $0xc58] sm:$0xff]  ;;  %v1341_v10 = vld [vmem:[#allocation12 + $0x110] sm:$0xff]  ;;  %v1340_v15 = vld [vmem:[#allocation12 + $0x108] sm:$0xff] }
 0x124   :  { %2257 = vmatprep.subr.bf16.mxu1 %v2256_v12  ;;  %v511_v12 = vld [vmem:[#allocation11 + $0xb80] sm:$0xff] }
 0x125   :  { %2163 = vmatpush1.bf16.msra.mxu0 %v2162_v40  ;;  %v2270_v40 = vpack.c.bf16 %v178_v39, %v169_v37  ;;  %v2309_v27 = vpack.c.bf16 %v520_v23, %v511_v12  ;;  %v2315_v37 = vpack.c.bf16 %v556_v36, %v547_v35  ;;  %v574_v39 = vld [vmem:[#allocation11 + $0xd78] sm:$0xff]  ;;  %v1343_v12 = vld [vmem:[#allocation12 + $0x120] sm:$0xff] }
 0x126   :  { %2165 = vmatprep.subr.bf16.mxu0 %v2164_v44  ;;  %v439_v44 = vld [vmem:[#allocation11 + $0x940] sm:$0xff] }
 0x127   :  { %2259 = vmatpush1.bf16.msra.mxu1 %v2258_v29  ;;  %v2297_v53 = vpack.c.bf16 %v448_v48, %v439_v44  ;;  %v2292_v29 = vpack.c.bf16 %v430_v25, %v421_v24  ;;  %v2320_v44 = vpack.c.bf16 %v1311_v42, %v1308_v41  ;;  %v1317_v48 = vld [vmem:[#allocation12 + $0x50] sm:$0xff]  ;;  %v2348_v24 = vpack.c.bf16 %v1353_v22, %v1350_v21  ;;  %v1363_v42 = vld [vmem:[#allocation12 + $0x1c0] sm:$0xff] }
 0x128   :  { %2261 = vmatprep.subr.bf16.mxu1 %v2260_v34  ;;  %v2294_v34 = vpack.c.bf16 %v286_v31, %v277_v30  ;;  %v1349_v25 = vld [vmem:[#allocation12 + $0x150] sm:$0xff]  ;;  %v1359_v30 = vld [vmem:[#allocation12 + $0x1a0] sm:$0xff] }
 0x129   :  { %2167 = vmatpush1.bf16.msra.mxu0 %v2166_v50  ;;  %v358_v50 = vld [vmem:[#allocation11 + $0x6b8] sm:$0xff]  ;;  %v1357_v31 = vld [vmem:[#allocation12 + $0x190] sm:$0xff] }
 0x12a   :  { %2265 = vmatprep.subr.bf16.mxu0 %v2264_v32  ;;  %v2276_v55 = vpack.c.bf16 %v358_v50, %v349_v49  ;;  %v529_v32 = vld [vmem:[#allocation11 + $0xc10] sm:$0xff]  ;;  %v2324_v50 = vpack.c.bf16 %v1317_v48, %v1314_v47 }
 0x12b   :  { %2263 = vmatpush1.bf16.msra.mxu1 %v2262_v43  ;;  %v1365_v41 = vld [vmem:[#allocation12 + $0x1d0] sm:$0xff] }
 0x12c   :  { %995 = vmatmul.mubr.f32.vlgmr.msra.gmra.mrb[2].mxu0 %v2862_v61  ;;  %2296 = vmatprep.subr.bf16.mxu1 %v2689_v58 }
 0x12d   :  { %1207 = vmatprep.mubr.f32.mxu0 %v2865_v3  ;;  %2267 = vmatpush3.bf16.msra.mxu0 %v2266_v20  ;;  %v2312_v20 = vpack.c.bf16 %v538_v33, %v529_v32  ;;  %v1360_v33 = vld [vmem:[#allocation12 + $0x1a8] sm:$0xff] }
 0x12e   :  { %2269 = vmatprep.subr.bf16.mxu0 %v2268_v38  ;;  %1137 = vmatmul.mubr.f32.vlgmr.msra.gmra.mrb[2].mxu1 %v2862_v61  ;;  %v565_v38 = vld [vmem:[#allocation11 + $0xd30] sm:$0xff]  ;;  %v2384_v35 = vpack.c.bf16 %v1360_v33, %v1357_v31 }
 0x12f   :  { %2298 = vmatpush3.bf16.msra.mxu1 %v2297_v53  ;;  %1877 = vmatprep.mubr.msk.f32.mxu1 %vm2690_vm0, %v2688_v51  ;;  %v2288_v51 = vpack.c.bf16 %v412_v17, %v403_v16  ;;  %v2318_v43 = vpack.c.bf16 %v574_v39, %v565_v38  ;;  %v1316_v53 = vld [vmem:[#allocation12 + $0x48] sm:$0xff]  ;;  %v1347_v17 = vld [vmem:[#allocation12 + $0x140] sm:$0xff]  ;;  %v1385_v33 = vld [vmem:[#allocation12 + $0x270] sm:$0xff] }
 0x130   :  { %2299 = vmatprep.subr.bf16.mxu1 %v2689_v58  ;;  %v1344_v16 = vld [vmem:[#allocation12 + $0x128] sm:$0xff] }
 0x131   :  { %2271 = vmatpush3.bf16.msra.mxu0 %v2270_v40  ;;  %v2498_v40 = vld [vmem:[#allocation2] sm:$0xff]  ;;  %v1312_v38 = vld [vmem:[#allocation12 + $0x28] sm:$0xff] }
 0x132   :  { %2273 = vmatprep.subr.bf16.mxu0 %v2272_v45  ;;  %v1307_v45 = vld [vmem:[#allocation12] sm:$0xff] }
 0x133   :  { %2301 = vmatpush3.bf16.msra.mxu1 %v2300_v63  ;;  %v2322_v49 = vpack.c.bf16 %v1310_v46, %v1307_v45  ;;  %v2332_v63 = vpack.c.bf16 %v1329_v60, %v1326_v28  ;;  %v1361_v45 = vld [vmem:[#allocation12 + $0x1b0] sm:$0xff]  ;;  %v1364_v46 = vld [vmem:[#allocation12 + $0x1c8] sm:$0xff] }
 0x134   :  { %2302 = vmatprep.subr.bf16.mxu1 %v2689_v58  ;;  %v2358_v48 = vpack.c.bf16 %v1364_v46, %v1361_v45  ;;  %v1394_v45 = vld [vmem:[#allocation12 + $0x2b8] sm:$0xff]  ;;  %v1345_v46 = vld [vmem:[#allocation12 + $0x130] sm:$0xff] }
 0x135   :  { %2275 = vmatpush3.bf16.msra.mxu0 %v2274_v52  ;;  %v1313_v52 = vld [vmem:[#allocation12 + $0x30] sm:$0xff] }
 0x136   :  { %2277 = vmatprep.subr.bf16.mxu0 %v2276_v55  ;;  %v1323_v55 = vld [vmem:[#allocation12 + $0x80] sm:$0xff]  ;;  %v2326_v56 = vpack.c.bf16 %v1316_v53, %v1313_v52  ;;  %v1368_v53 = vld [vmem:[#allocation12 + $0x1e8] sm:$0xff] }
 0x137   :  { %2304 = vmatpush3.bf16.msra.mxu1 %v2303_v9  ;;  %v2328_v57 = vpack.c.bf16 %v1323_v55, %v1320_v54  ;;  %v1338_v9 = vld [vmem:[#allocation12 + $0xf8] sm:$0xff]  ;;  %v1371_v54 = vld [vmem:[#allocation12 + $0x200] sm:$0xff]  ;;  %v1369_v55 = vld [vmem:[#allocation12 + $0x1f0] sm:$0xff] }
 0x138   :  { %2305 = vmatprep.subr.bf16.mxu1 %v2689_v58  ;;  %v2340_v13 = vpack.c.bf16 %v1341_v10, %v1338_v9 }
 0x139   :  { %2279 = vmatpush3.bf16.msra.mxu0 %v2278_v62 }
 0x13a   :  { %2281 = vmatprep.subr.bf16.mxu0 %v2280_v1  ;;  %v1328_v1 = vld [vmem:[#allocation12 + $0xa8] sm:$0xff] }
 0x13b   :  { %2307 = vmatpush3.bf16.msra.mxu1 %v2306_v19  ;;  %v2334_v5 = vpack.c.bf16 %v1328_v1, %v1325_v0  ;;  %v2344_v19 = vpack.c.bf16 %v1347_v17, %v1344_v16  ;;  %v1374_v1 = vld [vmem:[#allocation12 + $0x218] sm:$0xff]  ;;  %v1383_v16 = vld [vmem:[#allocation12 + $0x260] sm:$0xff]  ;;  %v1381_v17 = vld [vmem:[#allocation12 + $0x250] sm:$0xff] }
 0x13c   :  { %2308 = vmatprep.subr.bf16.mxu1 %v2689_v58 }
 0x13d   :  { %2283 = vmatpush3.bf16.msra.mxu0 %v2282_v8  ;;  %v1334_v8 = vld [vmem:[#allocation12 + $0xd8] sm:$0xff] }
 0x13e   :  { %2285 = vmatprep.subr.bf16.mxu0 %v2284_v11  ;;  %v2338_v11 = vpack.c.bf16 %v1334_v8, %v1331_v7  ;;  %v1373_v7 = vld [vmem:[#allocation12 + $0x210] sm:$0xff]  ;;  %v1376_v8 = vld [vmem:[#allocation12 + $0x228] sm:$0xff] }
 0x13f   :  { %2310 = vmatpush3.bf16.msra.mxu1 %v2309_v27  ;;  %v2366_v10 = vpack.c.bf16 %v1376_v8, %v1373_v7 }
 0x140   :  { %2311 = vmatprep.subr.bf16.mxu1 %v2689_v58 }
 0x141   :  { %2287 = vmatpush3.bf16.msra.mxu0 %v2286_v18  ;;  %v2342_v18 = vpack.c.bf16 %v1340_v15, %v1337_v14  ;;  %v1380_v15 = vld [vmem:[#allocation12 + $0x248] sm:$0xff] }
 0x142   :  { %2289 = vmatprep.subr.bf16.mxu0 %v2288_v51  ;;  %v1346_v51 = vld [vmem:[#allocation12 + $0x138] sm:$0xff] }
 0x143   :  { %2313 = vmatpush3.bf16.msra.mxu1 %v2312_v20  ;;  %v2346_v23 = vpack.c.bf16 %v1346_v51, %v1343_v12  ;;  %v1358_v20 = vld [vmem:[#allocation12 + $0x198] sm:$0xff]  ;;  %v1379_v12 = vld [vmem:[#allocation12 + $0x240] sm:$0xff] }
 0x144   :  { %2314 = vmatprep.subr.bf16.mxu1 %v2689_v58  ;;  %v1382_v51 = vld [vmem:[#allocation12 + $0x258] sm:$0xff] }
 0x145   :  { %2291 = vmatpush3.bf16.msra.mxu0 %v2290_v26  ;;  %v1352_v26 = vld [vmem:[#allocation12 + $0x168] sm:$0xff]  ;;  %v2370_v22 = vpack.c.bf16 %v1382_v51, %v1379_v12 }
 0x146   :  { %2293 = vmatprep.subr.bf16.mxu0 %v2292_v29  ;;  %v2350_v27 = vpack.c.bf16 %v1352_v26, %v1349_v25  ;;  %v1356_v29 = vld [vmem:[#allocation12 + $0x188] sm:$0xff]  ;;  %v1386_v25 = vld [vmem:[#allocation12 + $0x278] sm:$0xff] }
 0x147   :  { %2316 = vmatpush3.bf16.msra.mxu1 %v2315_v37  ;;  %v2352_v32 = vpack.c.bf16 %v1359_v30, %v1356_v29  ;;  %v1309_v37 = vld [vmem:[#allocation12 + $0x10] sm:$0xff]  ;;  %v1387_v29 = vld [vmem:[#allocation12 + $0x280] sm:$0xff]  ;;  %v1390_v30 = vld [vmem:[#allocation12 + $0x298] sm:$0xff] }
 0x148   :  { %2317 = vmatprep.subr.bf16.mxu1 %v2689_v58  ;;  %v1319_v58 = vld [vmem:[#allocation12 + $0x60] sm:$0xff]  ;;  %v2386_v39 = vpack.c.bf16 %v1312_v38, %v1309_v37  ;;  %v1392_v37 = vld [vmem:[#allocation12 + $0x2a8] sm:$0xff] }
 0x149   :  { %2295 = vmatpush3.bf16.msra.mxu0 %v2294_v34  ;;  %v2330_v62 = vpack.c.bf16 %v1322_v59, %v1319_v58  ;;  %v1355_v34 = vld [vmem:[#allocation12 + $0x180] sm:$0xff]  ;;  %v1370_v59 = vld [vmem:[#allocation12 + $0x1f8] sm:$0xff] }
 0x14a   :  { %v2354_v36 = vpack.c.bf16 %v1358_v20, %v1355_v34  ;;  %2385 = vmatprep.subr.bf16.mxu0 %v2384_v35  ;;  %v1367_v58 = vld [vmem:[#allocation12 + $0x1e0] sm:$0xff]  ;;  %v1388_v34 = vld [vmem:[#allocation12 + $0x288] sm:$0xff] }
 0x14b   :  { %2319 = vmatpush3.bf16.msra.mxu1 %v2318_v43  ;;  %v2362_v60 = vpack.c.bf16 %v1370_v59, %v1367_v58  ;;  %v1339_v20 = vld [vmem:[#allocation12 + $0x100] sm:$0xff]  ;;  %v2374_v35 = vpack.c.bf16 %v1388_v34, %v1385_v33  ;;  %v1569_v34 = vld [vmem:[#allocation14 + $0x8] sm:$0xff] }
 0x14c   :  { %1208 = vmatmul.mubr.f32.vlgmr.msra.gmra.mrb[4].mxu0 %v2498_v40  ;;  %2321 = vmatprep.subr.bf16.mxu1 %v2320_v44  ;;  %v1362_v40 = vld [vmem:[#allocation12 + $0x1b8] sm:$0xff]  ;;  %v1395_v38 = vld [vmem:[#allocation12 + $0x2c0] sm:$0xff] }
 0x14d   :  { %1538 = vmatprep.mubr.f32.mxu0 %v2862_v61  ;;  %2387 = vmatpush3.bf16.msra.mxu0 %v2386_v39  ;;  %v2356_v43 = vpack.c.bf16 %v1365_v41, %v1362_v40  ;;  %v1366_v44 = vld [vmem:[#allocation12 + $0x1d8] sm:$0xff]  ;;  %v2376_v40 = vpack.c.bf16 %v1395_v38, %v1392_v37  ;;  %v1393_v41 = vld [vmem:[#allocation12 + $0x2b0] sm:$0xff]  ;;  %v1351_v59 = vld [vmem:[#allocation12 + $0x160] sm:$0xff] }
 0x14e   :  { %1878 = vmatmul.mubr.f32.vlgmr.msra.gmra.mrb[4].mxu1 %v2862_v61  ;;  %v2388_v47 = vpack.c.bf16 %v1366_v44, %v1363_v42  ;;  %v1396_v42 = vld [vmem:[#allocation12 + $0x2c8] sm:$0xff]  ;;  %v1568_v33 = vld [vmem:[#allocation14] sm:$0xff]  ;;  %v1570_v38 = vld [vmem:[#allocation14 + $0x10] sm:$0xff] }
 0x14f   :  { %2323 = vmatpush1.bf16.msra.mxu1 %v2322_v49  ;;  %1467 = vmatprep.mubr.f32.mxu1 %v2862_v61  ;;  %v1315_v49 = vld [vmem:[#allocation12 + $0x40] sm:$0xff]  ;;  %v2408_v44 = vpack.c.bf16 %v1396_v42, %v1393_v41  ;;  %v1589_v41 = vld [vmem:[#allocation14 + $0xa8] sm:$0xff] }
 0x150   :  { %2325 = vmatprep.subr.bf16.mxu1 %v2324_v50  ;;  %v1318_v50 = vld [vmem:[#allocation12 + $0x58] sm:$0xff]  ;;  %2389 = vmatprep.subr.bf16.mxu0 %v2388_v47  ;;  %v1348_v47 = vld [vmem:[#allocation12 + $0x148] sm:$0xff] }
 0x151   :  { %v2390_v52 = vpack.c.bf16 %v1318_v50, %v1315_v49  ;;  %v1398_v49 = vld [vmem:[#allocation12 + $0x2d8] sm:$0xff]  ;;  %v1401_v50 = vld [vmem:[#allocation12 + $0x2f0] sm:$0xff] }
 0x153   :  { %2327 = vmatpush1.bf16.msra.mxu1 %v2326_v56  ;;  %2391 = vmatpush3.bf16.msra.mxu0 %v2390_v52  ;;  %v2360_v56 = vpack.c.bf16 %v1371_v54, %v1368_v53  ;;  %v1399_v52 = vld [vmem:[#allocation12 + $0x2e0] sm:$0xff]  ;;  %v2410_v53 = vpack.c.bf16 %v1348_v47, %v1345_v46  ;;  %v2380_v54 = vpack.c.bf16 %v1401_v50, %v1398_v49  ;;  %v1590_v46 = vld [vmem:[#allocation14 + $0xb0] sm:$0xff]  ;;  %v1591_v47 = vld [vmem:[#allocation14 + $0xb8] sm:$0xff] }
 0x154   :  { %2329 = vmatprep.subr.bf16.mxu1 %v2328_v57  ;;  %v1372_v57 = vld [vmem:[#allocation12 + $0x208] sm:$0xff]  ;;  %v1574_v49 = vld [vmem:[#allocation14 + $0x30] sm:$0xff]  ;;  %v1575_v50 = vld [vmem:[#allocation14 + $0x38] sm:$0xff] }
 0x155   :  { %v2392_v28 = vpack.c.bf16 %v1372_v57, %v1369_v55  ;;  %v1402_v55 = vld [vmem:[#allocation12 + $0x2f8] sm:$0xff]  ;;  %v1400_v57 = vld [vmem:[#allocation12 + $0x2e8] sm:$0xff] }
 0x156   :  { %v2412_v58 = vpack.c.bf16 %v1402_v55, %v1399_v52  ;;  %v2430_v52 = vpack.c.bf16 %v1575_v50, %v1574_v49 }
 0x157   :  { %2331 = vmatpush1.bf16.msra.mxu1 %v2330_v62  ;;  %v1321_v62 = vld [vmem:[#allocation12 + $0x70] sm:$0xff]  ;;  %2393 = vmatprep.subr.bf16.mxu0 %v2392_v28  ;;  %v1354_v28 = vld [vmem:[#allocation12 + $0x178] sm:$0xff] }
 0x158   :  { %2333 = vmatprep.subr.bf16.mxu1 %v2332_v63  ;;  %v1324_v63 = vld [vmem:[#allocation12 + $0x88] sm:$0xff] }
 0x159   :  { %v2394_v0 = vpack.c.bf16 %v1324_v63, %v1321_v62  ;;  %v2414_v62 = vpack.c.bf16 %v1354_v28, %v1351_v59  ;;  %v1594_v59 = vld [vmem:[#allocation14 + $0xd0] sm:$0xff]  ;;  %v1595_v28 = vld [vmem:[#allocation14 + $0xd8] sm:$0xff] }
 0x15b   :  { %2335 = vmatpush1.bf16.msra.mxu1 %v2334_v5  ;;  %2395 = vmatpush3.bf16.msra.mxu0 %v2394_v0  ;;  %v2364_v5 = vpack.c.bf16 %v1377_v2, %v1374_v1 }
 0x15c   :  { %2337 = vmatprep.subr.bf16.mxu1 %v2336_v6  ;;  %v1378_v6 = vld [vmem:[#allocation12 + $0x238] sm:$0xff] }
 0x15d   :  { %v2396_v9 = vpack.c.bf16 %v1378_v6, %v1375_v4 }
 0x15f   :  { %2339 = vmatpush1.bf16.msra.mxu1 %v2338_v11  ;;  %v1327_v11 = vld [vmem:[#allocation12 + $0xa0] sm:$0xff]  ;;  %2397 = vmatprep.subr.bf16.mxu0 %v2396_v9 }
 0x160   :  { %2341 = vmatprep.subr.bf16.mxu1 %v2340_v13  ;;  %v1330_v13 = vld [vmem:[#allocation12 + $0xb8] sm:$0xff] }
 0x161   :  { %v2398_v14 = vpack.c.bf16 %v1330_v13, %v1327_v11 }
 0x163   :  { %2343 = vmatpush1.bf16.msra.mxu1 %v2342_v18  ;;  %2399 = vmatpush3.bf16.msra.mxu0 %v2398_v14  ;;  %v2368_v18 = vpack.c.bf16 %v1383_v16, %v1380_v15 }
 0x164   :  { %2345 = vmatprep.subr.bf16.mxu1 %v2344_v19  ;;  %v1384_v19 = vld [vmem:[#allocation12 + $0x268] sm:$0xff] }
 0x165   :  { %v2400_v21 = vpack.c.bf16 %v1384_v19, %v1381_v17 }
 0x167   :  { %2347 = vmatpush1.bf16.msra.mxu1 %v2346_v23  ;;  %v1333_v23 = vld [vmem:[#allocation12 + $0xd0] sm:$0xff]  ;;  %2401 = vmatprep.subr.bf16.mxu0 %v2400_v21 }
 0x168   :  { %2349 = vmatprep.subr.bf16.mxu1 %v2348_v24  ;;  %v1336_v24 = vld [vmem:[#allocation12 + $0xe8] sm:$0xff] }
 0x169   :  { %v2402_v26 = vpack.c.bf16 %v1336_v24, %v1333_v23 }
 0x16b   :  { %2351 = vmatpush1.bf16.msra.mxu1 %v2350_v27  ;;  %v1389_v27 = vld [vmem:[#allocation12 + $0x290] sm:$0xff]  ;;  %2403 = vmatpush3.bf16.msra.mxu0 %v2402_v26 }
 0x16c   :  { %2353 = vmatprep.subr.bf16.mxu1 %v2352_v32  ;;  %v2372_v31 = vpack.c.bf16 %v1389_v27, %v1386_v25  ;;  %v2404_v32 = vpack.c.bf16 %v1390_v30, %v1387_v29  ;;  %v1584_v30 = vld [vmem:[#allocation14 + $0x80] sm:$0xff] }
 0x16e   :  { %2405 = vmatprep.subr.bf16.mxu0 %v2404_v32 }
 0x16f   :  { %2355 = vmatpush1.bf16.msra.mxu1 %v2354_v36  ;;  %v1342_v36 = vld [vmem:[#allocation12 + $0x118] sm:$0xff] }
 0x170   :  { %2357 = vmatprep.subr.bf16.mxu1 %v2356_v43  ;;  %v2406_v39 = vpack.c.bf16 %v1342_v36, %v1339_v20  ;;  %v1391_v43 = vld [vmem:[#allocation12 + $0x2a0] sm:$0xff]  ;;  %v2418_v20 = vpack.c.bf16 %v1569_v34, %v1568_v33  ;;  %v1587_v36 = vld [vmem:[#allocation14 + $0x98] sm:$0xff] }
 0x172   :  { %2407 = vmatpush3.bf16.msra.mxu0 %v2406_v39 }
 0x173   :  { %2359 = vmatpush1.bf16.msra.mxu1 %v2358_v48  ;;  %v2378_v48 = vpack.c.bf16 %v1394_v45, %v1391_v43  ;;  %2409 = vmatprep.subr.bf16.mxu0 %v2408_v44  ;;  %v1572_v43 = vld [vmem:[#allocation14 + $0x20] sm:$0xff]  ;;  %v1573_v44 = vld [vmem:[#allocation14 + $0x28] sm:$0xff] }
 0x174   :  { %2361 = vmatprep.subr.bf16.mxu1 %v2360_v56  ;;  %v1397_v56 = vld [vmem:[#allocation12 + $0x2d0] sm:$0xff]  ;;  %v2426_v45 = vpack.c.bf16 %v1573_v44, %v1572_v43 }
 0x176   :  { %2411 = vmatpush3.bf16.msra.mxu0 %v2410_v53  ;;  %v1592_v53 = vld [vmem:[#allocation14 + $0xc0] sm:$0xff] }
 0x177   :  { %2363 = vmatpush1.bf16.msra.mxu1 %v2362_v60  ;;  %v2382_v60 = vpack.c.bf16 %v1400_v57, %v1397_v56  ;;  %2413 = vmatprep.subr.bf16.mxu0 %v2412_v58  ;;  %v1576_v56 = vld [vmem:[#allocation14 + $0x40] sm:$0xff]  ;;  %v1577_v57 = vld [vmem:[#allocation14 + $0x48] sm:$0xff] }
 0x178   :  { %2365 = vmatprep.subr.bf16.mxu1 %v2364_v5  ;;  %v2434_v58 = vpack.c.bf16 %v1577_v57, %v1576_v56 }
 0x17a   :  { %2415 = vmatpush3.bf16.msra.mxu0 %v2414_v62  ;;  %v2436_v62 = vpack.c.bf16 %v1595_v28, %v1594_v59 }
 0x17b   :  { %2367 = vmatpush1.bf16.msra.mxu1 %v2366_v10 }
 0x17c   :  { %2369 = vmatprep.subr.bf16.mxu1 %v2368_v18 }
 0x17f   :  { %2371 = vmatpush1.bf16.msra.mxu1 %v2370_v22 }
 0x180   :  { %2373 = vmatprep.subr.bf16.mxu1 %v2372_v31  ;;  %v1585_v31 = vld [vmem:[#allocation14 + $0x88] sm:$0xff] }
 0x181   :  { %v2416_v32 = vpack.c.bf16 %v1585_v31, %v1584_v30 }
 0x183   :  { %2375 = vmatpush1.bf16.msra.mxu1 %v2374_v35  ;;  %2417 = vmatprep.subr.bf16.mxu0 %v2416_v32  ;;  %v1586_v35 = vld [vmem:[#allocation14 + $0x90] sm:$0xff] }
 0x184   :  { %2377 = vmatprep.subr.bf16.mxu1 %v2376_v40  ;;  %v2420_v37 = vpack.c.bf16 %v1587_v36, %v1586_v35  ;;  %v1588_v40 = vld [vmem:[#allocation14 + $0xa0] sm:$0xff] }
 0x185   :  { %v2424_v42 = vpack.c.bf16 %v1589_v41, %v1588_v40 }
 0x187   :  { %2379 = vmatpush1.bf16.msra.mxu1 %v2378_v48  ;;  %v2428_v48 = vpack.c.bf16 %v1591_v47, %v1590_v46 }
 0x188   :  { %2381 = vmatprep.subr.bf16.mxu1 %v2380_v54  ;;  %v1593_v54 = vld [vmem:[#allocation14 + $0xc8] sm:$0xff] }
 0x189   :  { %v2432_v55 = vpack.c.bf16 %v1593_v54, %v1592_v53 }
 0x18b   :  { %2383 = vmatpush1.bf16.msra.mxu1 %v2382_v60  ;;  %v1578_v60 = vld [vmem:[#allocation14 + $0x50] sm:$0xff] }
 0x19f   :  { %v712_v63 = vpop.f32.mrb[0].mxu0  ;;  %v854_v0 = vpop.f32.mrb[0].mxu1 }
 0x1a0   :  { %v714_v1 = vpop.f32.mrb[1].mxu0  ;;  %v856_v2 = vpop.f32.mrb[1].mxu1 }
 0x1a1   :  { %v1283_v4 = vadd.f32 %v856_v2, %v712_v63  ;;  %v1579_v63 = vld [vmem:[#allocation14 + $0x58] sm:$0xff] }
 0x1a2   :  { %v2438_v2 = vpack.c.bf16 %v1579_v63, %v1578_v60 }
 0x1a3   :  { %v1719_v5 = vmul.f32 -1.442695, %v1283_v4 }
 0x1a5   :  { %2476 = vpow2.f32 %v1719_v5  ;;  %v1580_v5 = vld [vmem:[#allocation14 + $0x60] sm:$0xff] }
 0x1af   :  { %v2477_v6 = vpop.eup %2476 }
 0x1b0   :  { %v1287_v7 = vadd.f32 1.0, %v2477_v6  ;;  %v1581_v6 = vld [vmem:[#allocation14 + $0x68] sm:$0xff] }
 0x1b2   :  { %2478 = vrcp.f32 %v1287_v7  ;;  %v1598_v7 = vld [vmem:[#allocation14 + $0xf0] sm:$0xff] }
 0x1bc   :  { %v2479_v9 = vpop.eup %2478 }
 0x1ff   :  { %v996_v8 = vpop.f32.mrb[2].mxu0 }
 0x200   :  { %v1290_v10 = vadd.f32 %v996_v8, %v714_v1  ;;  %v998_v11 = vpop.f32.mrb[3].mxu0  ;;  %v1597_v1 = vld [vmem:[#allocation14 + $0xe8] sm:$0xff]  ;;  %v1599_v8 = vld [vmem:[#allocation14 + $0xf8] sm:$0xff] }
 0x201   :  { %v1297_v13 = vmul.f32 %v2479_v9, %v998_v11  ;;  %v2442_v9 = vpack.c.bf16 %v1581_v6, %v1580_v5  ;;  %v1582_v11 = vld [vmem:[#allocation14 + $0x70] sm:$0xff] }
 0x202   :  { %v1720_v14 = vmul.f32 -1.442695, %v1290_v10  ;;  %v2444_v10 = vpack.c.bf16 %v1599_v8, %v1598_v7 }
 0x203   :  { %v1298_v15 = vadd.f32 %v1297_v13, %v854_v0  ;;  %v1596_v0 = vld [vmem:[#allocation14 + $0xe0] sm:$0xff]  ;;  %v1583_v13 = vld [vmem:[#allocation14 + $0x78] sm:$0xff] }
 0x204   :  { %2480 = vpow2.f32 %v1720_v14  ;;  %v2440_v4 = vpack.c.bf16 %v1597_v1, %v1596_v0  ;;  %v2446_v14 = vpack.c.bf16 %v1583_v13, %v1582_v11 }
 0x20e   :  { %v2481_v16 = vpop.eup %2480 }
 0x20f   :  { %v1294_v17 = vadd.f32 1.0, %v2481_v16 }
 0x211   :  { %2482 = vrcp.f32 %v1294_v17 }
 0x212   :  { %2484 = vtanh.f32 %v1298_v15 }
 0x21b   :  { %v2483_v18 = vpop.eup %2482 }
 0x21c   :  { %v1300_v19 = vsub.f32 1.0, %v2483_v18  ;;  %v2485_v12 = vpop.eup %2484  ;;  %v1302_v21 = vmul.f32 %v2865_v3, %v2483_v18 }
 0x21e   :  { %v1301_v51 = vmul.f32 %v2485_v12, %v1300_v19 }
 0x21f   :  { %v1755_v23 = vpop.f32.mrb[4].mxu0 }
 0x220   :  { %v1303_v22 = vadd.f32 %v1302_v21, %v1301_v51  ;;  %v1756_v24 = vpop.f32.mrb[5].mxu0 }
 0x221   :  { %v1757_v25 = vadd.f32 %v1756_v24, %v1755_v23  ;;  %v1279_v26 = vpop.f32.mrb[4].mxu1 }
 0x222   :  { %1468 = vmatmul.mubr.f32.vlgmr.msra.gmra.mrb[2].mxu1 %v1303_v22  ;;  %1539 = vmatmul.mubr.f32.vlgmr.msra.gmra.mrb[6].mxu0 %v1303_v22  ;;  %v1879_v29 = vpop.f32.mrb[5].mxu1 }
 0x223   :  { %1664 = vmatprep.mubr.f32.mxu0 %v2862_v61  ;;  %v2883_v27 = vadd.f32 %v1757_v25, %v1279_v26  ;;  %2419 = vmatpush3.bf16.msra.mxu0 %v2418_v20  ;;  %v1571_v61 = vld [vmem:[#allocation14 + $0x18] sm:$0xff] }
 0x224   :  { %v2422_v39 = vpack.c.bf16 %v1571_v61, %v1570_v38  ;;  %2421 = vmatprep.subr.bf16.mxu0 %v2420_v37 }
 0x227   :  { %2423 = vmatpush3.bf16.msra.mxu0 %v2422_v39 }
 0x228   :  { %2425 = vmatprep.subr.bf16.mxu0 %v2424_v42 }
 0x22b   :  { %2427 = vmatpush3.bf16.msra.mxu0 %v2426_v45 }
 0x22c   :  { %2429 = vmatprep.subr.bf16.mxu0 %v2428_v48 }
 0x22f   :  { %2431 = vmatpush3.bf16.msra.mxu0 %v2430_v52 }
 0x230   :  { %2433 = vmatprep.subr.bf16.mxu0 %v2432_v55 }
 0x233   :  { %2435 = vmatpush3.bf16.msra.mxu0 %v2434_v58 }
 0x234   :  { %2437 = vmatprep.subr.bf16.mxu0 %v2436_v62 }
 0x237   :  { %2439 = vmatpush3.bf16.msra.mxu0 %v2438_v2 }
 0x238   :  { %2441 = vmatprep.subr.bf16.mxu0 %v2440_v4 }
 0x23b   :  { %2443 = vmatpush3.bf16.msra.mxu0 %v2442_v9 }
 0x23c   :  { %2445 = vmatprep.subr.bf16.mxu0 %v2444_v10 }
 0x23f   :  { %2447 = vmatpush3.bf16.msra.mxu0 %v2446_v14 }
 0x2f5   :  { %v1469_v15 = vpop.f32.mrb[2].mxu1  ;;  %v1807_v16 = vpop.f32.mrb[6].mxu0 }
 0x2f6   :  { %v1721_v17 = vmul.f32 -1.442695, %v1469_v15  ;;  %v1471_v18 = vpop.f32.mrb[3].mxu1  ;;  %v1808_v19 = vpop.f32.mrb[7].mxu0 }
 0x2f7   :  { %v1809_v12 = vadd.f32 %v1808_v19, %v1807_v16  ;;  %v1722_v51 = vmul.f32 -1.442695, %v1471_v18 }
 0x2f8   :  { %2486 = vpow2.f32 %v1721_v17 }
 0x2f9   :  { %2488 = vpow2.f32 %v1722_v51 }
 0x302   :  { %v2487_v21 = vpop.eup %2486 }
 0x303   :  { %v1548_v22 = vadd.f32 1.0, %v2487_v21  ;;  %v2489_v23 = vpop.eup %2488 }
 0x304   :  { %v1555_v24 = vadd.f32 1.0, %v2489_v23 }
 0x305   :  { %2490 = vrcp.f32 %v1548_v22 }
 0x306   :  { %2492 = vrcp.f32 %v1555_v24 }
 0x30f   :  { %v2491_v25 = vpop.eup %2490 }
 0x310   :  { %v1558_v26 = vmul.f32 %v2491_v25, %v2883_v27  ;;  %v2493_v30 = vpop.eup %2492 }
 0x311   :  { %v1561_v31 = vsub.f32 1.0, %v2493_v30  ;;  %v1563_v34 = vmul.f32 %v2865_v3, %v2493_v30 }
 0x312   :  { %v1559_v29 = vadd.f32 %v1809_v12, %v1558_v26 }
 0x314   :  { %2494 = vtanh.f32 %v1559_v29 }
 0x31e   :  { %v2495_v32 = vpop.eup %2494 }
 0x31f   :  { %v1562_v33 = vmul.f32 %v2495_v32, %v1561_v31 }
 0x321   :  { %v1564_v20 = vadd.f32 %v1563_v34, %v1562_v33 }
 0x323   :  { %1665 = vmatmul.mubr.f32.vlgmr.msra.gmra.mrb[8].mxu0 %v1564_v20  ;;  %1671 = vst [vmem:[#allocation16] sm:$0xff] %v1564_v20 }
 0x324   :  { %2630 = shalt.err (!%p2627_p5)
}
 0x325   :  { %s2631_s17 = scalar_lea.hbm %s2918_s7, 128 }
 0x326   :  { %p2632_p6 = scmp.ne.s32.totalorder %s2918_s7, %s2631_s17  ;;  %p2635_p7 = scmp.lt.u32.totalorder %s2631_s17, %s2918_s7 }
 0x328   :  { %p2637_p8 = pnand %p2635_p7, %p2632_p6 }
 0x32a   :  { %2640 = shalt.err (!%p2637_p8)
}
 0x32b   :  { %1691 = dma.vmem_to_hbm [thread:$0]  %s1689_s27, 128, %s2918_s7, [#allocation17]  }
 0x32c   :  { %s2692_s23 = smov [#allocation15]  }
 0x32d   :  { %s1678_s5 = sshll.u32 %s2692_s23, 4  ;;  %s1679_s5 = int_to_ptr.vmem [resolvable:$true] %s1678_s5 }
 0x32e   :  { %s2641_s0 = scalar_lea.vmem %s1679_s5, 128  ;;  %p2646_p10 = scmp.lt.s32.totalorder %s1679_s5, %s1679_s5 }
 0x32f   :  { %p2642_p9 = scmp.ne.s32.totalorder %s1679_s5, %s2641_s0  ;;  %p2647_p11 = scmp.lt.s32.totalorder %s2641_s0, %s2641_s0 }
 0x331   :  { %p2648_p12 = por %p2647_p11, %p2646_p10 }
 0x333   :  { %p2649_p13 = pnand %p2648_p12, %p2642_p9 }
 0x3f6   :  { %v1842_v3 = vpop.f32.mrb[8].mxu0 }
 0x3f7   :  { %v1843_v27 = vpop.f32.mrb[9].mxu0 }
 0x3f8   :  { %v1844_v35 = vadd.f32 %v1843_v27, %v1842_v3 }
 0x3fa   :  { %1670 = vst [vmem:[#allocation15] sm:$0xff] %v1844_v35 }
 0x3fb   :  { %2652 = shalt.err (!%p2649_p13)
}
 0x3fc   :  { %s2653_s25 = scalar_lea.hbm %s2917_s6, 128 }
 0x3fd   :  { %p2654_p0 = scmp.ne.s32.totalorder %s2917_s6, %s2653_s25  ;;  %p2657_p1 = scmp.lt.u32.totalorder %s2653_s25, %s2917_s6 }
 0x3ff   :  { %p2659_p2 = pnand %p2657_p1, %p2654_p0 }
 0x401   :  { %2662 = shalt.err (!%p2659_p2)
}
 0x402   :  { %1681 = dma.vmem_to_hbm [thread:$0]  %s1679_s5, 128, %s2917_s6, [#allocation6]  }
 0x403   :  { %2671 = dma.done.wait [#allocation6], 128  }
 0x404   :  { %2672 = vsyncadd [#allocation6], 4294967168 }
 0x405   :  { %2673 = dma.done.wait [#allocation17], 128  }
 0x406   :  { %2674 = vsyncadd [#allocation17], 4294967168 }
 0x407   :  { %1698 = vsyncpa [#allocation5], 1 }
 0x408   :  { %1699 = vsyncpa [#allocation10], 1 }
 0x409   :  { %1700 = vsyncpa [#allocation13], 1 }
 0x40a   :  { %1701 = vsyncpa [#allocation6], 1 }
 0x40b   :  { %1702 = vsyncpa [#allocation17], 1 }
 0x40c   :  { %1703 = vsyncpa [#allocation7], 1 }

</bundles_post_ra>
